<compile_context>
chip_gen: v5e
topology: v5e:2x2
jax: 0.10.0
libtpu: 0.0.40
codegen_flags: <defaults>
</compile_context>

<pallas_src>
import functools

import numpy as np
import jax
import jax.numpy as jnp
from jax import lax
from jax.experimental import pallas as pl
from jax.experimental.pallas import tpu as pltpu

EPS = 1e-5
ACT_DTYPE = jnp.bfloat16   # set to jnp.float32 for bit-exact f32 numerics


# ----------------------------- tiling helpers -----------------------------

def _pick_row_tile(M, cap=16384, align=256):
    """Row tile for the pointwise matmul.  M <= cap -> single full block.  Otherwise
    the largest divisor of M that is a multiple of `align` and <= cap; fallback is
    tile=cap with zero-padded rows (sliced off by the caller)."""
    if M <= cap:
        return M, M
    best = 0
    d = 1
    while d * d <= M:
        if M % d == 0:
            for c in (d, M // d):
                if c <= cap and c % align == 0 and c > best:
                    best = c
        d += 1
    if best:
        return best, M
    return cap, ((M + cap - 1) // cap) * cap


def _node_row_tile(H, W, target_pix=1024):
    """Rows per grid step for the 3x3 node conv (M = TH*W pixels per MXU matmul)."""
    if H * W <= target_pix:
        return H
    for t in range(H - 1, 0, -1):
        if H % t == 0 and t * W <= target_pix and (t * W) % 16 == 0:
            return t
    return H


def _deconv_row_tile(H, W, C, s, target_bytes=512 * 1024):
    """Rows per grid step for the deconv (bounds the output block in VMEM)."""
    if H * W * C * s * s * 2 <= target_bytes:
        return H
    for t in range(H - 1, 0, -1):
        if H % t == 0 and t * W * C * s * s * 2 <= target_bytes:
            return t
    return 1


# ----------------------------- shared in-kernel halo loader -----------------------------

def _halo_slab(x_ref, r, TH, W, H):
    """x_ref: (1, H*W, C) resident row-major-flattened NHWC image.  Returns a
    ((TH+2)*W, C) slab covering image rows [r*TH - 1, r*TH + TH] with rows that fall
    outside the image zeroed.  Replaces the old jnp.pad HBM round trip."""
    M = TH * W
    y0 = r * TH
    main = x_ref[0, pl.ds(pl.multiple_of(y0 * W, M), M), :]
    top = x_ref[0, pl.ds(jnp.maximum(y0 - 1, 0) * W, W), :]
    bot = x_ref[0, pl.ds(jnp.minimum(y0 + TH, H - 1) * W, W), :]
    top = top * (y0 > 0).astype(top.dtype)
    bot = bot * (y0 + TH < H).astype(bot.dtype)
    return jnp.concatenate([top, main, bot], axis=0)


# ----------------------------- 1x1 conv + folded BN + ReLU -----------------------------

def _pw_kernel(x_ref, w_ref, b_ref, o_ref):
    # x: (tm, Cin) bf16, w: (Cin, Cout) bf16 (BN scale pre-folded), b: (1, Cout) f32.
    y = jnp.dot(x_ref[...], w_ref[...], preferred_element_type=jnp.float32)
    o_ref[...] = jnp.maximum(y + b_ref[...], 0.0).astype(o_ref.dtype)


def pointwise_conv_bn_relu(x, w, bias):
    """1x1 conv + folded-BN bias + ReLU.  x: (N,H,W,Cin), w: (Cin,Cout) scale-folded."""
    N, H, W, Cin = x.shape
    Cout = w.shape[1]
    M = N * H * W
    tm, Mp = _pick_row_tile(M)
    xm = x.reshape(M, Cin)
    if Mp != M:  # pad rows so the grid tiles evenly; sliced back below
        xm = jnp.pad(xm, ((0, Mp - M), (0, 0)))
    out = pl.pallas_call(
        _pw_kernel,
        out_shape=jax.ShapeDtypeStruct((Mp, Cout), ACT_DTYPE),
        grid=(Mp // tm,),
        in_specs=[
            pl.BlockSpec((tm, Cin), lambda i: (i, 0)),
            pl.BlockSpec((Cin, Cout), lambda i: (0, 0)),
            pl.BlockSpec((1, Cout), lambda i: (0, 0)),
        ],
        out_specs=pl.BlockSpec((tm, Cout), lambda i: (i, 0)),
        compiler_params=pltpu.CompilerParams(dimension_semantics=("parallel",)),
    )(xm, w, bias.reshape(1, Cout))
    if Mp != M:
        out = out[:M]
    return out.reshape(N, H, W, Cout)


# ----------------------------- fused concat + 3x3 conv + folded BN + ReLU -----------------------------

def _node_kernel(H, W, TH, a_ref, b_ref, w_ref, bias_ref, o_ref):
    # a/b  : (1, H*W, C)    flattened-pixel images, resident across the row-block axis
    # w    : (3, 6C, Cout)  per-ky im2col-packed weight (rows ordered kx-major, [a|b])
    # bias : (1, Cout) f32
    # o    : (1, TH*W, Cout) output row block r = pl.program_id(1)
    M = TH * W
    C = a_ref.shape[-1]
    r = pl.program_id(1)

    a_slab = _halo_slab(a_ref, r, TH, W, H)              # ((TH+2)*W, C)
    b_slab = _halo_slab(b_ref, r, TH, W, H)
    zpx = jnp.zeros((1, C), a_slab.dtype)                # +/-1 pixel guards (always masked)
    a_sp = jnp.concatenate([zpx, a_slab, zpx], axis=0)
    b_sp = jnp.concatenate([zpx, b_slab, zpx], axis=0)

    # left/right image-edge validity for the kx = 0 / 2 taps
    col = lax.broadcasted_iota(jnp.int32, (M, 1), 0) % W
    lmask = (col != 0).astype(a_sp.dtype)
    rmask = (col != W - 1).astype(a_sp.dtype)
    masks = (lmask, None, rmask)

    acc = jnp.zeros((M, o_ref.shape[-1]), jnp.float32)
    for ky in range(3):                                  # 3 MXU matmuls / block, K = 6C
        parts = []
        for kx in range(3):
            start = ky * W + kx
            a_t = a_sp[start:start + M]
            b_t = b_sp[start:start + M]
            if masks[kx] is not None:
                a_t = a_t * masks[kx]
                b_t = b_t * masks[kx]
            parts.append(a_t)
            parts.append(b_t)
        cols = jnp.concatenate(parts, axis=-1)           # (M, 6C) im2col along kx + Cin
        acc = acc + jnp.dot(cols, w_ref[ky], preferred_element_type=jnp.float32)
    y = acc + bias_ref[...]
    o_ref[0] = jnp.maximum(y, 0.0).astype(o_ref.dtype)


def node_conv3x3_bn_relu(a, b, w_pk, bias, row_tile=None):
    """3x3 conv (stride 1, pad 1) over the channel concat [a, b] + folded-BN bias +
    ReLU.  The channel concat never touches HBM (weight packed along kx and both Cin
    halves into the contraction dim) and the 1-pixel zero pad is applied in-kernel."""
    N, H, W, C = a.shape
    assert a.shape == b.shape
    Cout = w_pk.shape[-1]
    TH = row_tile if row_tile is not None else _node_row_tile(H, W)
    assert H % TH == 0 and (TH == H or (TH * W) % 16 == 0)
    af = a.reshape(N, H * W, C)
    bf = b.reshape(N, H * W, C)
    # TODO(synk): at production resolutions also halo-tile the *inputs* (manual
    # make_async_copy double-buffer) so the resident block stays within v7x's 64 MiB.
    out = pl.pallas_call(
        functools.partial(_node_kernel, H, W, TH),
        out_shape=jax.ShapeDtypeStruct((N, H * W, Cout), ACT_DTYPE),
        grid=(N, H // TH),
        in_specs=[
            pl.BlockSpec((1, H * W, C), lambda n, r: (n, 0, 0)),
            pl.BlockSpec((1, H * W, C), lambda n, r: (n, 0, 0)),
            pl.BlockSpec(w_pk.shape, lambda n, r: (0, 0, 0)),
            pl.BlockSpec((1, Cout), lambda n, r: (0, 0)),
        ],
        out_specs=pl.BlockSpec((1, TH * W, Cout), lambda n, r: (n, r, 0)),
        compiler_params=pltpu.CompilerParams(
            dimension_semantics=("parallel", "parallel")),
    )(af, bf, w_pk, bias.reshape(1, Cout))
    return out.reshape(N, H, W, Cout)


# ----------------------------- polyphase depthwise ConvTranspose2d -----------------------------

def _deconv_kernel(H, W, TH, s, x_ref, w_ref, o_ref):
    # x : (1, H*W, C)        original-resolution input (flattened pixels), resident
    # w : (2s, 2s, 1, C)     PyTorch-layout (unflipped) depthwise taps, f32
    # o : (1, TH*s, W, s*C)  interleaved output row block (free HBM reshape to NHWC)
    M = TH * W
    p = s // 2
    r = pl.program_id(1)

    slab = _halo_slab(x_ref, r, TH, W, H).astype(jnp.float32)    # ((TH+2)*W, C)
    # the three row-shifted views dy = -1 / 0 / +1 (block-local, shared by all phases)
    A = [slab[d * W:d * W + M] for d in range(3)]

    col = lax.broadcasted_iota(jnp.int32, (M, 1), 0) % W
    cmask = {-1: (col != 0).astype(jnp.float32),
             +1: (col != W - 1).astype(jnp.float32)}

    for py in range(s):
        ky0 = py + p
        dy1, ky1 = (-1, py + p + s) if py < p else (+1, py + p - s)
        R0, R1 = A[1], A[1 + dy1]
        row_parts = []
        for px in range(s):
            kx0 = px + p
            dx1, kx1 = (-1, px + p + s) if px < p else (+1, px + p - s)
            t0 = R0 * w_ref[ky0, kx0] + R1 * w_ref[ky1, kx0]
            t1 = R0 * w_ref[ky0, kx1] + R1 * w_ref[ky1, kx1]
            # second x-tap reads column bx + dx1: shift on the XLU (roll) and zero the
            # image-edge wrap instead of materializing shifted input copies
            t1 = pltpu.roll(t1, (-dx1) % M, axis=0) * cmask[dx1]
            row_parts.append((t0 + t1).astype(o_ref.dtype))
        rows_py = jnp.concatenate(row_parts, axis=-1)            # (M, s*C) px-interleaved
        for t in range(TH):
            o_ref[0, s * t + py] = rows_py[t * W:(t + 1) * W]


def deconv_depthwise(x, w, s, row_tile=None):
    """Depthwise ConvTranspose2d(C, C, k=2s, stride=s, pad=s//2, groups=C, bias=False)
    via polyphase decomposition: every output phase touches exactly 2x2 taps (4 MACs /
    output pixel on the original-resolution input).  No zero-inserted intermediate, no
    HBM pad and no phase-interleave transpose — the kernel stores the upsampled map in
    (N, H*s, W, s*C) layout which reshapes for free to NHWC."""
    assert s % 2 == 0  # TODO(synk): odd upsample factors would need a different tap split
    N, H, W, C = x.shape
    K = 2 * s
    TH = row_tile if row_tile is not None else _deconv_row_tile(H, W, C, s)
    assert H % TH == 0
    xf = x.reshape(N, H * W, C)
    out = pl.pallas_call(
        functools.partial(_deconv_kernel, H, W, TH, s),
        out_shape=jax.ShapeDtypeStruct((N, H * s, W, s * C), ACT_DTYPE),
        grid=(N, H // TH),
        in_specs=[
            pl.BlockSpec((1, H * W, C), lambda n, r: (n, 0, 0)),
            pl.BlockSpec((K, K, 1, C), lambda n, r: (0, 0, 0, 0)),
        ],
        out_specs=pl.BlockSpec((1, TH * s, W, s * C), lambda n, r: (n, r, 0, 0)),
        compiler_params=pltpu.CompilerParams(
            dimension_semantics=("parallel", "parallel")),
    )(xf, w)
    return out.reshape(N, H * s, W * s, C)


# ----------------------------- pure-JAX references (for validation) -----------------------------

def ref_pointwise(x, w, bias):
    N, H, W, Cin = x.shape
    y = jnp.dot(x.reshape(-1, Cin), w, preferred_element_type=jnp.float32) + bias
    return jnp.maximum(y, 0.0).astype(ACT_DTYPE).reshape(N, H, W, -1)


def ref_node(a, b, w_hwio, bias):
    x = jnp.concatenate([a, b], axis=-1)
    y = lax.conv_general_dilated(
        x, w_hwio, (1, 1), ((1, 1), (1, 1)),
        dimension_numbers=("NHWC", "HWIO", "NHWC"),
        preferred_element_type=jnp.float32)
    return jnp.maximum(y + bias, 0.0).astype(ACT_DTYPE)


def ref_deconv(x, w, s):
    K = 2 * s
    p = s // 2
    C = x.shape[-1]
    wf = w[::-1, ::-1]                                  # spatially flipped taps
    y = lax.conv_general_dilated(
        x.astype(jnp.float32), wf, (1, 1),
        ((K - 1 - p, K - 1 - p), (K - 1 - p, K - 1 - p)),
        lhs_dilation=(s, s),
        dimension_numbers=("NHWC", "HWIO", "NHWC"),
        feature_group_count=C)
    return y.astype(ACT_DTYPE)


# ----------------------------- parameter construction (BN folded at build time) -----------------------------

def _bn_fold(key, cout):
    kg, kb, km, kv = jax.random.split(key, 4)
    gamma = 1.0 + 0.1 * jax.random.normal(kg, (cout,), jnp.float32)
    beta = 0.1 * jax.random.normal(kb, (cout,), jnp.float32)
    mean = 0.1 * jax.random.normal(km, (cout,), jnp.float32)
    var = jnp.abs(1.0 + 0.1 * jax.random.normal(kv, (cout,), jnp.float32))
    scale = gamma / jnp.sqrt(var + EPS)
    bias = beta - mean * scale
    return scale, bias


def make_proj(key, cin, cout):
    """ConvBlock(cin, cout, k=1) + BN + ReLU; BN scale folded into the weight."""
    kw, kbn = jax.random.split(key)
    w = jax.random.normal(kw, (cin, cout), jnp.float32) / np.sqrt(cin)
    scale, bias = _bn_fold(kbn, cout)
    return {"w": (w * scale[None, :]).astype(ACT_DTYPE), "bias": bias}


def make_node(key, cout):
    """ConvBlock(2*cout, cout, k=3) + BN + ReLU; weight im2col-packed per ky."""
    kw, kbn = jax.random.split(key)
    cin = 2 * cout
    w = jax.random.normal(kw, (3, 3, cin, cout), jnp.float32) / np.sqrt(cin * 9)
    scale, bias = _bn_fold(kbn, cout)
    w_hwio = (w * scale[None, None, None, :]).astype(ACT_DTYPE)
    w_pk = w_hwio.reshape(3, 3 * cin, cout)     # rows ordered (kx, [a-half | b-half])
    return {"w_pk": w_pk, "w_hwio": w_hwio, "bias": bias}


def make_deconv(key, c, s):
    """Depthwise ConvTranspose2d weight; PyTorch (C,1,K,K) stored unflipped as (K,K,1,C)."""
    K = 2 * s
    w = jax.random.normal(key, (c, K, K), jnp.float32) / K   # == pytorch weight[:, 0]
    return {"s": s, "w": jnp.transpose(w, (1, 2, 0)).reshape(K, K, 1, c)}


# ----------------------------- model (mirrors the PyTorch modules) -----------------------------

class IDAUp:
    def __init__(self, key, out_channel, in_channels, scales):
        assert len(in_channels) == len(scales)
        self.in_channels = list(in_channels)
        self.projs, self.ups = [], []
        for i, cin in enumerate(in_channels):
            key, kp, ku = jax.random.split(key, 3)
            self.projs.append(None if cin == out_channel
                              else make_proj(kp, cin, out_channel))
            s = int(scales[i])
            self.ups.append(None if s == 1 else make_deconv(ku, out_channel, s))
        self.nodes = []
        for _ in range(1, len(in_channels)):
            key, kn = jax.random.split(key)
            self.nodes.append(make_node(kn, out_channel))

    def __call__(self, layers, use_ref=False):
        assert len(layers) == len(self.in_channels)
        layers = [l.astype(ACT_DTYPE) for l in layers]
        for i in range(len(layers)):
            x = layers[i]
            if self.projs[i] is not None:
                p = self.projs[i]
                x = (ref_pointwise if use_ref else pointwise_conv_bn_relu)(
                    x, p["w"], p["bias"])
            if self.ups[i] is not None:
                u = self.ups[i]
                x = (ref_deconv if use_ref else deconv_depthwise)(x, u["w"], u["s"])
            layers[i] = x
        agg_node = layers[0]
        nodes = []
        for i in range(1, len(layers)):
            n = self.nodes[i - 1]
            if use_ref:
                agg_node = ref_node(agg_node, layers[i], n["w_hwio"], n["bias"])
            else:
                agg_node = node_conv3x3_bn_relu(agg_node, layers[i],
                                                n["w_pk"], n["bias"])
            nodes.append(agg_node)
        return agg_node, nodes


class DLAUp:
    def __init__(self, key, out_channels, scales, in_channels=None):
        assert len(out_channels) == len(scales)
        if in_channels is not None:
            assert len(out_channels) == len(in_channels)
        else:
            in_channels = out_channels  # aliasing kept to mirror the PyTorch reference
        scales = np.array(scales, dtype=np.int32)
        self.idas = []
        for i in range(len(out_channels) - 1):
            j = -i - 2
            key, sub = jax.random.split(key)
            self.idas.append(IDAUp(sub, out_channels[j], in_channels[j:],
                                   list(scales[j:] // scales[j])))
            scales[j + 1:] = scales[j]
            in_channels[j + 1:] = [out_channels[j] for _ in out_channels[j + 1:]]

    def __call__(self, layers, use_ref=False):
        layers = list(layers)
        x = None
        for i in range(len(layers) - 1):
            x, y = self.idas[i](layers[-i - 2:], use_ref=use_ref)
            layers[-i - 1:] = y
        return x.astype(jnp.float32)


# ----------------------------- main -----------------------------

def _np(x):
    return np.asarray(x.astype(jnp.float32))


if __name__ == "__main__":
    key = jax.random.PRNGKey(0)
    out_channels = [16, 32, 64, 128]
    scales = [1, 2, 4, 8]
    N, H0 = 2, 16  # batch, spatial size of the finest level

    key, kparam = jax.random.split(key)
    model = DLAUp(kparam, list(out_channels), list(scales))

    # DLA base outputs: level k has channels out_channels[k] and spatial H0//scales[k].
    layers = []
    for c, s in zip(out_channels, scales):
        key, sub = jax.random.split(key)
        h = H0 // s
        layers.append(jax.random.normal(sub, (N, h, h, c), jnp.float32))

    # --- standalone kernel checks (exercise the halo / row-tiled code paths) ---
    key, k1, k2, k3, k4, k5 = jax.random.split(key, 6)
    a = jax.random.normal(k1, (N, 16, 16, 16), jnp.float32).astype(ACT_DTYPE)
    b = jax.random.normal(k2, (N, 16, 16, 16), jnp.float32).astype(ACT_DTYPE)
    npar = make_node(k3, 16)
    got = node_conv3x3_bn_relu(a, b, npar["w_pk"], npar["bias"], row_tile=4)
    want = ref_node(a, b, npar["w_hwio"], npar["bias"])
    np.testing.assert_allclose(_np(got), _np(want), atol=5e-2, rtol=5e-2)

    xd = jax.random.normal(k4, (N, 8, 8, 32), jnp.float32).astype(ACT_DTYPE)
    dpar = make_deconv(k5, 32, 2)
    got = deconv_depthwise(xd, dpar["w"], 2, row_tile=2)
    want = ref_deconv(xd, dpar["w"], 2)
    np.testing.assert_allclose(_np(got), _np(want), atol=5e-2, rtol=5e-2)

    # --- full DLAUp: Pallas kernels vs. pure-JAX reference ---
    out = jax.jit(model.__call__)(layers)
    out = jax.block_until_ready(out)
    ref = model(layers, use_ref=True)
    assert out.shape == (N, H0, H0, out_channels[0]), out.shape
    assert bool(jnp.all(jnp.isfinite(out)))
    np.testing.assert_allclose(np.asarray(out), np.asarray(ref), atol=6e-2, rtol=6e-2)
    print("KERNEL_OK")
</pallas_src>

<mosaic_0001>
module attributes {stable_mosaic.version = 11 : i64} {
  func.func @_node_kernel(%arg0: i32, %arg1: i32, %arg2: memref<1x256x16xbf16, #tpu.memory_space<vmem>>, %arg3: memref<1x256x16xbf16, #tpu.memory_space<vmem>>, %arg4: memref<3x96x16xbf16, #tpu.memory_space<vmem>>, %arg5: memref<1x16xf32, #tpu.memory_space<vmem>>, %arg6: memref<1x64x16xbf16, #tpu.memory_space<vmem>>) attributes {dimension_semantics = [#tpu.dimension_semantics<parallel>, #tpu.dimension_semantics<parallel>], iteration_bounds = array<i64: 2, 4>, scalar_prefetch = 0 : i64, scratch_operands = 0 : i64, tpu.core_type = #tpu.core_type<tc>, window_params = [{transform_indices = @transform_0, window_bounds = array<i64: 1, 256, 16>}, {transform_indices = @transform_1, window_bounds = array<i64: 1, 256, 16>}, {pipeline_mode = #tpu.pipeline_mode<synchronous>, transform_indices = @transform_2, window_bounds = array<i64: 3, 96, 16>}, {pipeline_mode = #tpu.pipeline_mode<synchronous>, transform_indices = @transform_3, window_bounds = array<i64: 1, 16>}, {transform_indices = @transform_4, window_bounds = array<i64: 1, 64, 16>}]} {
    %c4_i32 = arith.constant 4 : i32
    %0 = arith.muli %arg1, %c4_i32 : i32
    %c16_i32 = arith.constant 16 : i32
    %1 = arith.muli %0, %c16_i32 : i32
    %2 = tpu.assume_multiple %1, 64 : i32
    %c0 = arith.constant 0 : index
    %3 = arith.index_cast %2 : i32 to index
    %c0_0 = arith.constant 0 : index
    %4 = vector.load %arg2[%c0, %3, %c0_0] : memref<1x256x16xbf16, #tpu.memory_space<vmem>>, vector<1x64x16xbf16>
    %5 = vector.shape_cast %4 : vector<1x64x16xbf16> to vector<64x16xbf16>
    %c1_i32 = arith.constant 1 : i32
    %6 = arith.subi %0, %c1_i32 : i32
    %c0_i32 = arith.constant 0 : i32
    %7 = arith.maxsi %6, %c0_i32 : i32
    %c16_i32_1 = arith.constant 16 : i32
    %8 = arith.muli %7, %c16_i32_1 : i32
    %c0_2 = arith.constant 0 : index
    %9 = arith.index_cast %8 : i32 to index
    %c0_3 = arith.constant 0 : index
    %10 = vector.load %arg2[%c0_2, %9, %c0_3] : memref<1x256x16xbf16, #tpu.memory_space<vmem>>, vector<1x16x16xbf16>
    %11 = vector.shape_cast %10 : vector<1x16x16xbf16> to vector<16x16xbf16>
    %c4_i32_4 = arith.constant 4 : i32
    %12 = arith.addi %0, %c4_i32_4 : i32
    %c15_i32 = arith.constant 15 : i32
    %13 = arith.minsi %12, %c15_i32 : i32
    %c16_i32_5 = arith.constant 16 : i32
    %14 = arith.muli %13, %c16_i32_5 : i32
    %c0_6 = arith.constant 0 : index
    %15 = arith.index_cast %14 : i32 to index
    %c0_7 = arith.constant 0 : index
    %16 = vector.load %arg2[%c0_6, %15, %c0_7] : memref<1x256x16xbf16, #tpu.memory_space<vmem>>, vector<1x16x16xbf16>
    %17 = vector.shape_cast %16 : vector<1x16x16xbf16> to vector<16x16xbf16>
    %c0_i32_8 = arith.constant 0 : i32
    %18 = arith.cmpi sgt, %0, %c0_i32_8 : i32
    %19 = arith.extui %18 : i1 to i32
    %20 = arith.sitofp %19 : i32 to f32
    %21 = arith.truncf %20 : f32 to bf16
    %22 = vector.broadcast %21 : bf16 to vector<16x16xbf16>
    %23 = arith.mulf %11, %22 : vector<16x16xbf16>
    %c4_i32_9 = arith.constant 4 : i32
    %24 = arith.addi %0, %c4_i32_9 : i32
    %c16_i32_10 = arith.constant 16 : i32
    %25 = arith.cmpi slt, %24, %c16_i32_10 : i32
    %26 = arith.extui %25 : i1 to i32
    %27 = arith.sitofp %26 : i32 to f32
    %28 = arith.truncf %27 : f32 to bf16
    %29 = vector.broadcast %28 : bf16 to vector<16x16xbf16>
    %30 = arith.mulf %17, %29 : vector<16x16xbf16>
    %31 = tpu.concatenate %23, %5, %30 in 0 : vector<16x16xbf16>, vector<64x16xbf16>, vector<16x16xbf16> -> vector<96x16xbf16>
    %c4_i32_11 = arith.constant 4 : i32
    %32 = arith.muli %arg1, %c4_i32_11 : i32
    %c16_i32_12 = arith.constant 16 : i32
    %33 = arith.muli %32, %c16_i32_12 : i32
    %34 = tpu.assume_multiple %33, 64 : i32
    %c0_13 = arith.constant 0 : index
    %35 = arith.index_cast %34 : i32 to index
    %c0_14 = arith.constant 0 : index
    %36 = vector.load %arg3[%c0_13, %35, %c0_14] : memref<1x256x16xbf16, #tpu.memory_space<vmem>>, vector<1x64x16xbf16>
    %37 = vector.shape_cast %36 : vector<1x64x16xbf16> to vector<64x16xbf16>
    %c1_i32_15 = arith.constant 1 : i32
    %38 = arith.subi %32, %c1_i32_15 : i32
    %c0_i32_16 = arith.constant 0 : i32
    %39 = arith.maxsi %38, %c0_i32_16 : i32
    %c16_i32_17 = arith.constant 16 : i32
    %40 = arith.muli %39, %c16_i32_17 : i32
    %c0_18 = arith.constant 0 : index
    %41 = arith.index_cast %40 : i32 to index
    %c0_19 = arith.constant 0 : index
    %42 = vector.load %arg3[%c0_18, %41, %c0_19] : memref<1x256x16xbf16, #tpu.memory_space<vmem>>, vector<1x16x16xbf16>
    %43 = vector.shape_cast %42 : vector<1x16x16xbf16> to vector<16x16xbf16>
    %c4_i32_20 = arith.constant 4 : i32
    %44 = arith.addi %32, %c4_i32_20 : i32
    %c15_i32_21 = arith.constant 15 : i32
    %45 = arith.minsi %44, %c15_i32_21 : i32
    %c16_i32_22 = arith.constant 16 : i32
    %46 = arith.muli %45, %c16_i32_22 : i32
    %c0_23 = arith.constant 0 : index
    %47 = arith.index_cast %46 : i32 to index
    %c0_24 = arith.constant 0 : index
    %48 = vector.load %arg3[%c0_23, %47, %c0_24] : memref<1x256x16xbf16, #tpu.memory_space<vmem>>, vector<1x16x16xbf16>
    %49 = vector.shape_cast %48 : vector<1x16x16xbf16> to vector<16x16xbf16>
    %c0_i32_25 = arith.constant 0 : i32
    %50 = arith.cmpi sgt, %32, %c0_i32_25 : i32
    %51 = arith.extui %50 : i1 to i32
    %52 = arith.sitofp %51 : i32 to f32
    %53 = arith.truncf %52 : f32 to bf16
    %54 = vector.broadcast %53 : bf16 to vector<16x16xbf16>
    %55 = arith.mulf %43, %54 : vector<16x16xbf16>
    %c4_i32_26 = arith.constant 4 : i32
    %56 = arith.addi %32, %c4_i32_26 : i32
    %c16_i32_27 = arith.constant 16 : i32
    %57 = arith.cmpi slt, %56, %c16_i32_27 : i32
    %58 = arith.extui %57 : i1 to i32
    %59 = arith.sitofp %58 : i32 to f32
    %60 = arith.truncf %59 : f32 to bf16
    %61 = vector.broadcast %60 : bf16 to vector<16x16xbf16>
    %62 = arith.mulf %49, %61 : vector<16x16xbf16>
    %63 = tpu.concatenate %55, %37, %62 in 0 : vector<16x16xbf16>, vector<64x16xbf16>, vector<16x16xbf16> -> vector<96x16xbf16>
    %cst = arith.constant 0.000000e+00 : bf16
    %64 = vector.broadcast %cst : bf16 to vector<1x16xbf16>
    %65 = tpu.concatenate %64, %31, %64 in 0 : vector<1x16xbf16>, vector<96x16xbf16>, vector<1x16xbf16> -> vector<98x16xbf16>
    %66 = tpu.concatenate %64, %63, %64 in 0 : vector<1x16xbf16>, vector<96x16xbf16>, vector<1x16xbf16> -> vector<98x16xbf16>
    %67 = tpu.iota {dimensions = array<i32: 0>} : vector<64x1xi32>
    %c16_i32_28 = arith.constant 16 : i32
    %c0_i32_29 = arith.constant 0 : i32
    %68 = arith.cmpi eq, %c16_i32_28, %c0_i32_29 : i32
    %c1_i32_30 = arith.constant 1 : i32
    %69 = arith.select %68, %c1_i32_30, %c16_i32_28 : i32
    %70 = vector.broadcast %69 : i32 to vector<64x1xi32>
    %71 = arith.remsi %67, %70 : vector<64x1xi32>
    %c0_i32_31 = arith.constant 0 : i32
    %72 = vector.broadcast %c0_i32_31 : i32 to vector<64x1xi32>
    %73 = arith.cmpi ne, %71, %72 : vector<64x1xi32>
    %c0_i32_32 = arith.constant 0 : i32
    %74 = vector.broadcast %c0_i32_32 : i32 to vector<64x1xi32>
    %75 = arith.cmpi slt, %71, %74 : vector<64x1xi32>
    %c0_i32_33 = arith.constant 0 : i32
    %76 = arith.cmpi slt, %69, %c0_i32_33 : i32
    %77 = vector.broadcast %76 : i1 to vector<64x1xi1>
    %78 = vector.broadcast %77 : vector<64x1xi1> to vector<64x1xi1>
    %79 = arith.xori %75, %78 : vector<64x1xi1>
    %80 = arith.andi %79, %73 : vector<64x1xi1>
    %81 = vector.broadcast %69 : i32 to vector<64x1xi32>
    %82 = arith.addi %71, %81 : vector<64x1xi32>
    %83 = arith.select %80, %82, %71 : vector<64x1xi1>, vector<64x1xi32>
    %c0_i32_34 = arith.constant 0 : i32
    %84 = vector.broadcast %c0_i32_34 : i32 to vector<64x1xi32>
    %85 = arith.cmpi ne, %83, %84 : vector<64x1xi32>
    %86 = arith.extui %85 : vector<64x1xi1> to vector<64x1xi32>
    %87 = arith.sitofp %86 : vector<64x1xi32> to vector<64x1xf32>
    %88 = arith.truncf %87 : vector<64x1xf32> to vector<64x1xbf16>
    %c15_i32_35 = arith.constant 15 : i32
    %89 = vector.broadcast %c15_i32_35 : i32 to vector<64x1xi32>
    %90 = arith.cmpi ne, %83, %89 : vector<64x1xi32>
    %91 = arith.extui %90 : vector<64x1xi1> to vector<64x1xi32>
    %92 = arith.sitofp %91 : vector<64x1xi32> to vector<64x1xf32>
    %93 = arith.truncf %92 : vector<64x1xf32> to vector<64x1xbf16>
    %cst_36 = arith.constant 0.000000e+00 : f32
    %94 = vector.broadcast %cst_36 : f32 to vector<64x16xf32>
    %95 = vector.extract_strided_slice %65 {offsets = [0, 0], sizes = [64, 16], strides = [1, 1]} : vector<98x16xbf16> to vector<64x16xbf16>
    %96 = vector.extract_strided_slice %66 {offsets = [0, 0], sizes = [64, 16], strides = [1, 1]} : vector<98x16xbf16> to vector<64x16xbf16>
    %97 = vector.broadcast %88 : vector<64x1xbf16> to vector<64x16xbf16>
    %98 = arith.mulf %95, %97 : vector<64x16xbf16>
    %99 = vector.broadcast %88 : vector<64x1xbf16> to vector<64x16xbf16>
    %100 = arith.mulf %96, %99 : vector<64x16xbf16>
    %101 = vector.extract_strided_slice %65 {offsets = [1, 0], sizes = [64, 16], strides = [1, 1]} : vector<98x16xbf16> to vector<64x16xbf16>
    %102 = vector.extract_strided_slice %66 {offsets = [1, 0], sizes = [64, 16], strides = [1, 1]} : vector<98x16xbf16> to vector<64x16xbf16>
    %103 = vector.extract_strided_slice %65 {offsets = [2, 0], sizes = [64, 16], strides = [1, 1]} : vector<98x16xbf16> to vector<64x16xbf16>
    %104 = vector.extract_strided_slice %66 {offsets = [2, 0], sizes = [64, 16], strides = [1, 1]} : vector<98x16xbf16> to vector<64x16xbf16>
    %105 = vector.broadcast %93 : vector<64x1xbf16> to vector<64x16xbf16>
    %106 = arith.mulf %103, %105 : vector<64x16xbf16>
    %107 = vector.broadcast %93 : vector<64x1xbf16> to vector<64x16xbf16>
    %108 = arith.mulf %104, %107 : vector<64x16xbf16>
    %109 = tpu.concatenate %98, %100, %101, %102, %106, %108 in 1 : vector<64x16xbf16>, vector<64x16xbf16>, vector<64x16xbf16>, vector<64x16xbf16>, vector<64x16xbf16>, vector<64x16xbf16> -> vector<64x96xbf16>
    %c0_37 = arith.constant 0 : index
    %c0_38 = arith.constant 0 : index
    %c0_39 = arith.constant 0 : index
    %110 = vector.load %arg4[%c0_37, %c0_38, %c0_39] : memref<3x96x16xbf16, #tpu.memory_space<vmem>>, vector<1x96x16xbf16>
    %111 = vector.shape_cast %110 : vector<1x96x16xbf16> to vector<96x16xbf16>
    %cst_40 = arith.constant dense<0.000000e+00> : vector<64x16xf32>
    %112 = tpu.matmul %109, %111, %cst_40 {dimension_numbers = #tpu.dot_dimension_numbers<[1], [0], [0], [1], [0, 0, 1, 1], [], []>} : vector<64x96xbf16>, vector<96x16xbf16>, vector<64x16xf32> -> vector<64x16xf32>
    %113 = arith.addf %94, %112 : vector<64x16xf32>
    %114 = vector.extract_strided_slice %65 {offsets = [16, 0], sizes = [64, 16], strides = [1, 1]} : vector<98x16xbf16> to vector<64x16xbf16>
    %115 = vector.extract_strided_slice %66 {offsets = [16, 0], sizes = [64, 16], strides = [1, 1]} : vector<98x16xbf16> to vector<64x16xbf16>
    %116 = vector.broadcast %88 : vector<64x1xbf16> to vector<64x16xbf16>
    %117 = arith.mulf %114, %116 : vector<64x16xbf16>
    %118 = vector.broadcast %88 : vector<64x1xbf16> to vector<64x16xbf16>
    %119 = arith.mulf %115, %118 : vector<64x16xbf16>
    %120 = vector.extract_strided_slice %65 {offsets = [17, 0], sizes = [64, 16], strides = [1, 1]} : vector<98x16xbf16> to vector<64x16xbf16>
    %121 = vector.extract_strided_slice %66 {offsets = [17, 0], sizes = [64, 16], strides = [1, 1]} : vector<98x16xbf16> to vector<64x16xbf16>
    %122 = vector.extract_strided_slice %65 {offsets = [18, 0], sizes = [64, 16], strides = [1, 1]} : vector<98x16xbf16> to vector<64x16xbf16>
    %123 = vector.extract_strided_slice %66 {offsets = [18, 0], sizes = [64, 16], strides = [1, 1]} : vector<98x16xbf16> to vector<64x16xbf16>
    %124 = vector.broadcast %93 : vector<64x1xbf16> to vector<64x16xbf16>
    %125 = arith.mulf %122, %124 : vector<64x16xbf16>
    %126 = vector.broadcast %93 : vector<64x1xbf16> to vector<64x16xbf16>
    %127 = arith.mulf %123, %126 : vector<64x16xbf16>
    %128 = tpu.concatenate %117, %119, %120, %121, %125, %127 in 1 : vector<64x16xbf16>, vector<64x16xbf16>, vector<64x16xbf16>, vector<64x16xbf16>, vector<64x16xbf16>, vector<64x16xbf16> -> vector<64x96xbf16>
    %c1 = arith.constant 1 : index
    %c0_41 = arith.constant 0 : index
    %c0_42 = arith.constant 0 : index
    %129 = vector.load %arg4[%c1, %c0_41, %c0_42] : memref<3x96x16xbf16, #tpu.memory_space<vmem>>, vector<1x96x16xbf16>
    %130 = vector.shape_cast %129 : vector<1x96x16xbf16> to vector<96x16xbf16>
    %cst_43 = arith.constant dense<0.000000e+00> : vector<64x16xf32>
    %131 = tpu.matmul %128, %130, %cst_43 {dimension_numbers = #tpu.dot_dimension_numbers<[1], [0], [0], [1], [0, 0, 1, 1], [], []>} : vector<64x96xbf16>, vector<96x16xbf16>, vector<64x16xf32> -> vector<64x16xf32>
    %132 = arith.addf %113, %131 : vector<64x16xf32>
    %133 = vector.extract_strided_slice %65 {offsets = [32, 0], sizes = [64, 16], strides = [1, 1]} : vector<98x16xbf16> to vector<64x16xbf16>
    %134 = vector.extract_strided_slice %66 {offsets = [32, 0], sizes = [64, 16], strides = [1, 1]} : vector<98x16xbf16> to vector<64x16xbf16>
    %135 = vector.broadcast %88 : vector<64x1xbf16> to vector<64x16xbf16>
    %136 = arith.mulf %133, %135 : vector<64x16xbf16>
    %137 = vector.broadcast %88 : vector<64x1xbf16> to vector<64x16xbf16>
    %138 = arith.mulf %134, %137 : vector<64x16xbf16>
    %139 = vector.extract_strided_slice %65 {offsets = [33, 0], sizes = [64, 16], strides = [1, 1]} : vector<98x16xbf16> to vector<64x16xbf16>
    %140 = vector.extract_strided_slice %66 {offsets = [33, 0], sizes = [64, 16], strides = [1, 1]} : vector<98x16xbf16> to vector<64x16xbf16>
    %141 = vector.extract_strided_slice %65 {offsets = [34, 0], sizes = [64, 16], strides = [1, 1]} : vector<98x16xbf16> to vector<64x16xbf16>
    %142 = vector.extract_strided_slice %66 {offsets = [34, 0], sizes = [64, 16], strides = [1, 1]} : vector<98x16xbf16> to vector<64x16xbf16>
    %143 = vector.broadcast %93 : vector<64x1xbf16> to vector<64x16xbf16>
    %144 = arith.mulf %141, %143 : vector<64x16xbf16>
    %145 = vector.broadcast %93 : vector<64x1xbf16> to vector<64x16xbf16>
    %146 = arith.mulf %142, %145 : vector<64x16xbf16>
    %147 = tpu.concatenate %136, %138, %139, %140, %144, %146 in 1 : vector<64x16xbf16>, vector<64x16xbf16>, vector<64x16xbf16>, vector<64x16xbf16>, vector<64x16xbf16>, vector<64x16xbf16> -> vector<64x96xbf16>
    %c2 = arith.constant 2 : index
    %c0_44 = arith.constant 0 : index
    %c0_45 = arith.constant 0 : index
    %148 = vector.load %arg4[%c2, %c0_44, %c0_45] : memref<3x96x16xbf16, #tpu.memory_space<vmem>>, vector<1x96x16xbf16>
    %149 = vector.shape_cast %148 : vector<1x96x16xbf16> to vector<96x16xbf16>
    %cst_46 = arith.constant dense<0.000000e+00> : vector<64x16xf32>
    %150 = tpu.matmul %147, %149, %cst_46 {dimension_numbers = #tpu.dot_dimension_numbers<[1], [0], [0], [1], [0, 0, 1, 1], [], []>} : vector<64x96xbf16>, vector<96x16xbf16>, vector<64x16xf32> -> vector<64x16xf32>
    %151 = arith.addf %132, %150 : vector<64x16xf32>
    %c0_47 = arith.constant 0 : index
    %c0_48 = arith.constant 0 : index
    %152 = vector.load %arg5[%c0_47, %c0_48] : memref<1x16xf32, #tpu.memory_space<vmem>>, vector<1x16xf32>
    %153 = vector.broadcast %152 : vector<1x16xf32> to vector<64x16xf32>
    %154 = arith.addf %151, %153 : vector<64x16xf32>
    %cst_49 = arith.constant 0.000000e+00 : f32
    %155 = vector.broadcast %cst_49 : f32 to vector<64x16xf32>
    %156 = arith.maximumf %154, %155 : vector<64x16xf32>
    %157 = arith.truncf %156 : vector<64x16xf32> to vector<64x16xbf16>
    %c0_50 = arith.constant 0 : index
    %c0_51 = arith.constant 0 : index
    %c0_52 = arith.constant 0 : index
    %158 = vector.load %arg6[%c0_50, %c0_51, %c0_52] : memref<1x64x16xbf16, #tpu.memory_space<vmem>>, vector<1x64x16xbf16>
    %159 = vector.shape_cast %158 : vector<1x64x16xbf16> to vector<64x16xbf16>
    %160 = vector.shape_cast %157 : vector<64x16xbf16> to vector<1x64x16xbf16>
    tpu.vector_store %arg6[%c0_50, %c0_51, %c0_52], %160 {strides = array<i32>} : memref<1x64x16xbf16, #tpu.memory_space<vmem>>, vector<1x64x16xbf16>,
    return
  }
  func.func @transform_0(%arg0: i32, %arg1: i32) -> (i32, i32, i32) {
    %c0_i32 = arith.constant 0 : i32
    %c0_i32_0 = arith.constant 0 : i32
    %c0_i32_1 = arith.constant 0 : i32
    return %arg0, %c0_i32, %c0_i32_0 : i32, i32, i32
  }
  func.func @transform_1(%arg0: i32, %arg1: i32) -> (i32, i32, i32) {
    %c0_i32 = arith.constant 0 : i32
    %c0_i32_0 = arith.constant 0 : i32
    %c0_i32_1 = arith.constant 0 : i32
    return %arg0, %c0_i32, %c0_i32_0 : i32, i32, i32
  }
  func.func @transform_2(%arg0: i32, %arg1: i32) -> (i32, i32, i32) {
    %c0_i32 = arith.constant 0 : i32
    %c0_i32_0 = arith.constant 0 : i32
    %c0_i32_1 = arith.constant 0 : i32
    %c0_i32_2 = arith.constant 0 : i32
    return %c0_i32, %c0_i32_0, %c0_i32_1 : i32, i32, i32
  }
  func.func @transform_3(%arg0: i32, %arg1: i32) -> (i32, i32) {
    %c0_i32 = arith.constant 0 : i32
    %c0_i32_0 = arith.constant 0 : i32
    %c0_i32_1 = arith.constant 0 : i32
    return %c0_i32, %c0_i32_0 : i32, i32
  }
  func.func @transform_4(%arg0: i32, %arg1: i32) -> (i32, i32, i32) {
    %c0_i32 = arith.constant 0 : i32
    %c0_i32_0 = arith.constant 0 : i32
    return %arg0, %arg1, %c0_i32 : i32, i32, i32
  }
}

</mosaic_0001>

<bundles_post_ra>
// kernel: tpu_custom_call.1
= control target key start
LH: loop header
LB: loop body
LE: loop exit
PB: predicated region body
PF: predicated region fallthrough
CT: control target
= control target key end

     0   :  { %s2370_s15 = smov 0   ;;  %s2372_s16 = smov 0   ;;  %s3353_s0 = inlined_call_operand.vmem [shape: bf16[2,256,16], index: 0, kind: input, shape index: {}]   ;;  %s3354_s1 = inlined_call_operand.vmem [shape: bf16[2,256,16], index: 1, kind: input, shape index: {}]   ;;  %s3355_s2 = inlined_call_operand.vmem [shape: bf16[3,96,16], index: 2, kind: input, shape index: {}]   ;;  %s3356_s3 = inlined_call_operand.vmem [shape: f32[1,16], index: 3, kind: input, shape index: {}]   ;;  %s3357_s4 = inlined_call_operand.vmem [shape: bf16[2,256,16], index: 4, kind: output, shape index: {}]  }
   0x1   :  { %s2374_s17 = smov 0   ;;  %s2376_s18 = smov 0  }
   0x2   :  { %s2378_s19 = smov 0  }
   0x3 LB: > { %s23_s20 = sadd.s32 1, %s2328_s17  ;;  %s26_s21 = sadd.s32 1, %s2332_s18  ;;  %s2336_s19 = sphi %s2378_s19, %s14_s19   ;;  %s2332_s18 = sphi %s2376_s18, %s3403_s18   ;;  %s2328_s17 = sphi %s2374_s17, %s3402_s17   ;;  %s2324_s16 = sphi %s2372_s16, %s3401_s16   ;;  %s2320_s15 = sphi %s2370_s15, %s3400_s15  }
   0x4   : > { %p24_p0 = scmp.ge.s32.totalorder %s23_s20, 4  ;;  %p2031_p1 = scmp.ge.s32.totalorder %s2336_s19, 1 }
   0x5   : > { %p186_p2 = scmp.lt.s32.totalorder %s2336_s19, 9 }
   0x6   : > { %s3405_s20 = smov (%p24_p0, %s23_s20), 0  ;;  %s3407_s21 = smov (!%p24_p0, %s26_s21), %s2332_s18 }
   0x7   : > { %p187_p3 = pnand %p2031_p1, %p186_p2  ;;  %p28_p4 = scmp.ge.s32.totalorder %s3407_s21, 2 }
   0x9   : > { %s3409_s21 = smov (%p28_p4, %s3407_s21), 0  ;;  %190 = sbr.rel (%p187_p3) target bundleno = 443 (0x1bb), region = 36 }
   0xe   : > { %p221_p5 = scmp.lt.s32.totalorder %s2324_s16, 1  ;;  %s2040_s22 = sshll.u32 %s2320_s15, 6  ;;  %v529_v0 = vlaneseq  ;;  %v2338_v5 = vmov 1.0|1.0   ;;  %vm414_vm0 = vsmask.f32 256 }
   0xf   : > { %s244_s23 = sshra.s32 %s2040_s22, 3  ;;  %v2423_v6 = vunpack.c.l.bf16 %v2338_v5  ;;  %s2445_s8 = sshll.u32 %s2320_s15, 2  ;;  %vm881_vm2 = vsmask.f32 7424  ;;  %v3359_v43 = vmov 0.0   ;;  %vm771_vm5 = vcmask 1041408  }
  0x10   : > { %s3411_s16 = smov (!%p221_p5, %s2324_s16), 1  ;;  %v2405_v1 = vshrl.u32 %v529_v0, 7  ;;  %s2041_s24 = sshll.u32 %s244_s23, 2  ;;  %vm993_vm7 = vcmask 1046528   ;;  %vm469_vm9 = vcmask 1040384   ;;  %vm1051_vm14 = vcmask 130048  }
  0x11   : > { %s2200_s25 = sshll.u32 %s3411_s16, 7  ;;  %v2428_v11 = vrot.slane %v2423_v6, 6  ;;  %s2042_s9 = sadd.s32 4294967295, %s2445_s8  ;;  %vm2757_vm10 = vmand %vm469_vm9, %vm414_vm0  ;;  %vm1064_vm15 = vcmask 261120  }
  0x12   : > { %v532_v2 = vadd.s32 16, %v2405_v1  ;;  %v531_v3 = vadd.s32 8, %v2405_v1  ;;  %v2411_v4 = vadd.s32 24, %v2405_v1  ;;  %s2416_s28 = scalar_lea.vmem %s3354_s1, %s2200_s25  ;;  %s2421_s5 = scalar_lea.vmem %s3353_s0, %s2200_s25  ;;  %v542_v12 = vand.u32 15, %v2405_v1 }
  0x13   : > { %s355_s6 = scalar_lea.vmem %s2416_s28, %s2041_s24  ;;  %s247_s7 = scalar_lea.vmem %s2421_s5, %s2041_s24 }
  0x14   : > { %v556_v7 = vand.u32 15, %v532_v2  ;;  %v2207_v8 = vld [vmem:[%s355_s6 + $0x8] sm:$0xff]  ;;  %v2208_v9 = vld [vmem:[%s355_s6 + $0x10] sm:$0xff]  ;;  %v2209_v10 = vld [vmem:[%s355_s6 + $0x18] sm:$0xff]  ;;  %v549_v17 = vand.u32 15, %v531_v3  ;;  %v563_v18 = vand.u32 15, %v2411_v4 }
  0x15   : > { %v2431_v13 = vld [vmem:[%s355_s6] sm:$0xff]  ;;  %v2203_v15 = vld [vmem:[%s247_s7 + $0x8] sm:$0xff]  ;;  %v489_v19 = vshrl.u32 %v2207_v8, 16  ;;  %v497_v20 = vshrl.u32 %v2208_v9, 16  ;;  %v500_v21 = vshll.u32 %v2208_v9, 16  ;;  %v505_v22 = vshrl.u32 %v2209_v10, 16 }
  0x16   : > { %v2433_v14 = vld [vmem:[%s247_s7] sm:$0xff]  ;;  %vm2435_vm1 = vcmp.ne.s32.totalorder %v556_v7, 0  ;;  %v2204_v23 = vld [vmem:[%s247_s7 + $0x10] sm:$0xff]  ;;  %v508_v24 = vshll.u32 %v2209_v10, 16  ;;  %v481_v25 = vshrl.u32 %v2431_v13, 16  ;;  %v492_v26 = vshll.u32 %v2207_v8, 16 }
  0x17   : > { %v423_v27 = vshrl.u32 %v2433_v14, 16  ;;  %v2442_v28 = vld [vmem:[%s247_s7 + $0x18] sm:$0xff]  ;;  %v491_v29 = vrot.slane %v489_v19, 7  ;;  %v499_v30 = vrot.slane %v497_v20, 7  ;;  %v2447_v31 = vrot.slane %v505_v22, 7  ;;  %p276_p6 = scmp.gt.s32.totalorder %s2445_s8, 0 }
  0x18   : > { %v431_v32 = vshrl.u32 %v2203_v15, 16  ;;  %v2451_v33 = vrot.slane %v481_v25, 7  ;;  %v434_v35 = vshll.u32 %v2203_v15, 16  ;;  %v439_v36 = vshrl.u32 %v2204_v23, 16  ;;  %p2457_p7 = scmp.gt.s32.totalorder %s2042_s9, 0  ;;  %s2340_s25 = smov 48  }
  0x19   : > { %v2453_v34 = vrot.slane %v423_v27, 7  ;;  %v502_v37 = vor.u32 %v500_v21, %v499_v30  ;;  %v510_v38 = vor.u32 %v508_v24, %v2447_v31  ;;  %v494_v39 = vor.u32 %v492_v26, %v491_v29  ;;  %s277_s11 = scalar_select %p276_p6, 1, 0 }
  0x1a   : > { %v433_v40 = vrot.slane %v431_v32, 7  ;;  %v2462_v41 = vrot.slane %v439_v36, 7  ;;  %v442_v42 = vshll.u32 %v2204_v23, 16  ;;  %v2467_v44 = vsel %vm2435_vm1, 1.0, %v3359_v43  ;;  %s3413_s9 = smov (!%p2457_p7, %s2042_s9), 0  ;;  %s2341_s27 = smov 32  }
  0x1b   : > { %3374 = vst [vmem:[#allocation2_spill] sm:$0xff] %v2467_v44  ;;  %v447_v45 = vshrl.u32 %v2442_v28, 16  ;;  %v503_v46 = vsel %vm414_vm0, %v491_v29, %v502_v37  ;;  %v2472_v47 = vsel %vm414_vm0, %v499_v30, %v510_v38  ;;  %v495_v48 = vsel %vm414_vm0, %v2451_v33, %v494_v39  ;;  %s2480_s12 = scvt.s32.f32 %s277_s11  ;;  %s2043_s26 = sshll.u32 %s3413_s9, 4 }
  0x1c   : > { %v436_v49 = vor.u32 %v434_v35, %v433_v40  ;;  %vm2476_vm3 = vcmp.ne.s32.totalorder %v549_v17, 15  ;;  %v2483_v51 = vunpack.c.l.bf16 %v2472_v47  ;;  %v950_v52 = vshll.u32 %v503_v46, 16  ;;  %s2574_s29 = sshra.s32 %s2043_s26, 3  ;;  %s2342_s6 = smov 16  }
  0x1d   : > { %v954_v53 = vshrl.u32 %v503_v46, 16  ;;  %v958_v54 = vshll.u32 %v2472_v47, 16  ;;  %vm2486_vm4 = vcmp.ne.s32.totalorder %v563_v18, 15  ;;  %v2491_v56 = vunpack.c.h.bf16 %v2472_v47  ;;  %s281_s13 = sshrl.u32 %s2480_s12, 16  ;;  %p280_p8 = scmp.ne.f32.partialorder %s2480_s12, %s2480_s12 }
  0x1e   : > { %v2493_v57 = vunpack.c.l.bf16 %v503_v46  ;;  %v2495_v58 = vunpack.c.h.bf16 %v503_v46  ;;  %v942_v59 = vshll.u32 %v495_v48, 16  ;;  %v952_v60 = vrot.slane %v950_v52, 1  ;;  %s282_s14 = sand.u32 1, %s281_s13  ;;  %s2044_s7 = sshll.u32 %s2574_s29, 2 }
  0x1f   : > { %v2503_v61 = vrot.slane %v958_v54, 1  ;;  %v946_v62 = vshrl.u32 %v495_v48, 16  ;;  %v2505_v63 = vunpack.c.l.bf16 %v495_v48  ;;  %v2510_v2 = vunpack.c.h.bf16 %v495_v48  ;;  %s283_s22 = sadd.s32 32767, %s282_s14  ;;  %s365_s10 = scalar_lea.vmem %s2416_s28, %s2044_s7 }
  0x20   : > { %v2508_v0 = vrot.slane %v942_v59, 1  ;;  %v437_v3 = vsel %vm414_vm0, %v2453_v34, %v436_v49  ;;  %v444_v4 = vor.u32 %v442_v42, %v2462_v41  ;;  %v956_v5 = vor.u32 %v954_v53, %v952_v60  ;;  %s284_s23 = sadd.s32 %s283_s22, %s2480_s12  ;;  %s2343_s12 = smov 80  }
  0x21   : > { %v898_v7 = vshll.u32 %v437_v3, 16  ;;  %v902_v8 = vshrl.u32 %v437_v3, 16  ;;  %v2515_v9 = vunpack.c.l.bf16 %v437_v3  ;;  %v2519_v16 = vunpack.c.h.bf16 %v437_v3  ;;  %s285_s24 = sand.u32 4294901760, %s284_s23  ;;  %s2344_s13 = smov 64  }
  0x22   : > { %v948_v10 = vor.u32 %v946_v62, %v2508_v0  ;;  %v445_v15 = vsel %vm414_vm0, %v433_v40, %v444_v4  ;;  %v745_v17 = vmul.f32 %v2495_v58, %v2423_v6  ;;  %vm2525_vm6 = vcmp.ne.s32.totalorder %v542_v12, 0  ;;  %s3415_s24 = smov (%p280_p8, %s285_s24), 2143289344  ;;  %s2677_s14 = sadd.s32 4, %s2445_s8 }
  0x23   : > { %v961_v19 = vsel %vm881_vm2, %v956_v5, %v2503_v61  ;;  %v2534_v20 = vunpack.c.l.bf16 %v445_v15  ;;  %v2536_v21 = vunpack.c.h.bf16 %v445_v15  ;;  %v2538_v22 = vrot.slane %v898_v7, 1  ;;  %s288_s30 = sshrl.u32 %s3415_s24, 16  ;;  %p300_p9 = scmp.lt.s32.totalorder %s2677_s14, 16 }
  0x24   : > { %968 = vrot.lane.b32.xlu2 %v961_v19, %s2340_s25  ;;  %v953_v12 = vsel %vm881_vm2, %v948_v10, %v952_v60  ;;  %v906_v23 = vshll.u32 %v445_v15, 16  ;;  %v753_v24 = vpack.c.bf16 %v745_v17, %v745_v17  ;;  %v1550_v25 = vmul.f32 %v2467_v44, %v2493_v57  ;;  %s289_s9 = sshll.u32 %s288_s30, 16  ;;  %s263_s22 = scalar_lea.vmem %s2421_s5, %s2044_s7 }
  0x25   : > { %966 = vrot.lane.b32.xlu1 %v953_v12, %s2340_s25  ;;  %v904_v26 = vor.u32 %v902_v8, %v2538_v22  ;;  %v743_v27 = vmul.f32 %v2510_v2, %v2423_v6  ;;  %v1132_v29 = vmul.f32 %v2467_v44, %v2505_v63  ;;  %v2550_v30 = vrot.slane %v447_v45, 7  ;;  %s290_s11 = sor.u32 %s289_s9, %s288_s30  ;;  %p267_p10 = scmp.lt.s32.totalorder %s2677_s14, 15 }
  0x26   : > { %v908_v32 = vrot.slane %v906_v23, 1  ;;  %v2553_v35 = vunpack.c.l.b16 %v753_v24  ;;  %v1558_v36 = vpack.c.bf16 %v1550_v25, %v1550_v25  ;;  %v450_v37 = vshll.u32 %v2442_v28, 16  ;;  %s301_s8 = scalar_select %p300_p9, 1, 0 }
  0x27   : > { %v751_v38 = vpack.c.bf16 %v743_v27, %v743_v27  ;;  %v1140_v39 = vpack.c.bf16 %v1132_v29, %v1132_v29  ;;  %v910_v40 = vshrl.u32 %v445_v15, 16  ;;  %v2086_v42 = vsel %vm2476_vm3, 1.0, %v3359_v43  ;;  %s3417_s14 = smov (!%p267_p10, %s2677_s14), 15 }
  0x28   : > { %3381 = vst [vmem:[#allocation3_spill] sm:$0xff] %v2553_v35  ;;  %v909_v45 = vsel %vm881_vm2, %v904_v26, %v908_v32  ;;  %v1632_v46 = vunpack.c.l.b16 %v1558_v36  ;;  %v452_v48 = vor.u32 %v450_v37, %v2550_v30  ;;  %v2569_v28 = vsel %vm2486_vm4, 1.0, %v3359_v43  ;;  %s2723_s23 = scvt.s32.f32 %s301_s8  ;;  %s2045_s7 = sshll.u32 %s3417_s14, 4 }
  0x29   : > { %922 = vrot.lane.b32.xlu0 %v909_v45, %s2341_s27  ;;  %v2572_v49 = vunpack.c.l.b16 %v751_v38  ;;  %v1214_v52 = vunpack.c.l.b16 %v1140_v39  ;;  %v912_v53 = vor.u32 %v910_v40, %v908_v32  ;;  %v773_v50 = vrot.slane %v2086_v42, 6 }
  0x2a   : > { %v1639_v54 = vpack.c.b16 %v2553_v35, %v1632_v46  ;;  %v2579_v59 = vsel %vm414_vm0, %v2462_v41, %v452_v48  ;;  %v777_v55 = vrot.slane %v2569_v28, 6  ;;  %v1584_v60 = vmul.f32 %v2428_v11, %v2505_v63  ;;  %s305_s24 = sshrl.u32 %s2723_s23, 16  ;;  %p304_p11 = scmp.ne.f32.partialorder %s2723_s23, %s2723_s23 }
  0x2b   : > { %v1221_v62 = vpack.c.b16 %v2572_v49, %v1214_v52  ;;  %v2587_v3 = vunpack.c.l.bf16 %v2579_v59  ;;  %v914_v4 = vshll.u32 %v2579_v59, 16  ;;  %v2592_v5 = vsel %vm771_vm5, %v2428_v11, %v773_v50  ;;  %s2764_s26 = sand.u32 1, %s305_s24 }
  0x2c   : > { %1644 = vrot.lane.b32.xlu2 %v1639_v54, %s2342_s6  ;;  %v2597_v41 = vsel %vm771_vm5, %v773_v50, %v2428_v11  ;;  %v2603_v7 = vsel %vm771_vm5, %v2428_v11, %v777_v55  ;;  %v1585_v8 = vmul.f32 %v2592_v5, %v2510_v2  ;;  %v1593_v10 = vpack.c.bf16 %v1584_v60, %v1584_v60  ;;  %v2237_v54 = vld [vmem:[%s365_s10] sm:$0xff]   ;;  %s307_s29 = sadd.s32 32767, %s2764_s26  ;;  %s2807_s10 = sshra.s32 %s2045_s7, 3 }
  0x2d   : > { %1226 = vrot.lane.b32.xlu1 %v1221_v62, %s2342_s6  ;;  %v2609_v15 = vrot.slane %v914_v4, 1  ;;  %v1586_v17 = vmul.f32 %v2597_v41, %v2493_v57  ;;  %v1587_v19 = vmul.f32 %v2603_v7, %v2495_v58  ;;  %v2618_v12 = vsel %vm2525_vm6, 1.0, %v3359_v43  ;;  %s308_s30 = sadd.s32 %s307_s29, %s2723_s23 }
  0x2e   : > { %v1594_v23 = vpack.c.bf16 %v1585_v8, %v1585_v8  ;;  %v1719_v24 = vunpack.c.l.b16 %v1593_v10  ;;  %v1548_v25 = vmul.f32 %v2618_v12, %v2505_v63  ;;  %v1565_v26 = vmul.f32 %v2428_v11, %v2515_v9  ;;  %s309_s9 = sand.u32 4294901760, %s308_s30 }
  0x2f   : > { %v917_v27 = vsel %vm881_vm2, %v912_v53, %v2609_v15  ;;  %v1595_v29 = vpack.c.bf16 %v1586_v17, %v1586_v17  ;;  %v1596_v32 = vpack.c.bf16 %v1587_v19, %v1587_v19  ;;  %v1566_v18 = vmul.f32 %v2592_v5, %v2519_v16  ;;  %s3419_s9 = smov (%p304_p11, %s309_s9), 2143289344 }
  0x30   : > { %v1720_v36 = vunpack.c.l.b16 %v1594_v23  ;;  %v1556_v37 = vpack.c.bf16 %v1548_v25, %v1548_v25  ;;  %v1567_v38 = vmul.f32 %v2597_v41, %v2534_v20  ;;  %v1568_v39 = vmul.f32 %v2603_v7, %v2536_v21  ;;  %s312_s14 = sshrl.u32 %s3419_s9, 16 }
  0x31   : > { %924 = vrot.lane.b32.xlu0 %v917_v27, %s2341_s27  ;;  %v1721_v40 = vunpack.c.l.b16 %v1595_v29  ;;  %v1722_v42 = vunpack.c.l.b16 %v1596_v32  ;;  %v1574_v45 = vpack.c.bf16 %v1565_v26, %v1565_v26  ;;  %v1575_v46 = vpack.c.bf16 %v1566_v18, %v1566_v18 }
  0x32   : > { %v1728_v48 = vpack.c.b16 %v1720_v36, %v1719_v24  ;;  %v1630_v52 = vunpack.c.l.b16 %v1556_v37  ;;  %v1576_v53 = vpack.c.bf16 %v1567_v38, %v1567_v38  ;;  %v1577_v50 = vpack.c.bf16 %v1568_v39, %v1568_v39 }
  0x33   : > { %v1729_v60 = vpack.c.b16 %v1722_v42, %v1721_v40  ;;  %v1679_v62 = vunpack.c.l.b16 %v1574_v45  ;;  %v1680_v4 = vunpack.c.l.b16 %v1575_v46  ;;  %v291_v8 = vstv %s290_s11  ;;  %s2046_s11 = sshll.u32 %s2807_s10, 2 }
  0x34   : > { %v1733_v10 = vrot.slane %v1728_v48, 1  ;;  %v1638_v17 = vpack.c.b16 %v2572_v49, %v1630_v52  ;;  %v1681_v19 = vunpack.c.l.b16 %v1576_v53  ;;  %v1682_v23 = vunpack.c.l.b16 %v1577_v50  ;;  %s273_s8 = scalar_lea.vmem %s2421_s5, %s2046_s11  ;;  %s369_s23 = scalar_lea.vmem %s2416_s28, %s2046_s11 }
  0x35   : > { %v2641_v25 = vrot.slane %v1729_v60, 1  ;;  %v1688_v27 = vpack.c.b16 %v1680_v4, %v1679_v62  ;;  %v2643_v29 = vunpack.c.l.bf16 %v291_v8  ;;  %v2238_v26 = vunpack.c.l.bf16 %v2237_v54 }
  0x36   : > { %v1689_v24 = vpack.c.b16 %v1682_v23, %v1681_v19  ;;  %v2239_v32 = vunpack.c.h.bf16 %v2237_v54  ;;  %v484_v18 = vshll.u32 %v2431_v13, 16  ;;  %v535_v36 = vadd.s32 40, %v2405_v1 }
  0x37   : > { %v1735_v37 = vsel %vm993_vm7, %v1733_v10, %v2641_v25  ;;  %v1693_v38 = vrot.slane %v1688_v27, 1  ;;  %v374_v39 = vmul.f32 %v2238_v26, %v2643_v29  ;;  %v2654_v40 = vsel %vm771_vm5, %v777_v55, %v2428_v11 }
  0x38   : > { %1742 = vrot.lane.b32.xlu2 %v1735_v37, %s2343_s12  ;;  %v2657_v42 = vrot.slane %v1689_v24, 1  ;;  %v375_v13 = vmul.f32 %v2239_v32, %v2643_v29  ;;  %v486_v45 = vor.u32 %v484_v18, %v2451_v33  ;;  %v577_v46 = vand.u32 15, %v535_v36 }
  0x39   : > { %1642 = vrot.lane.b32.xlu0 %v1638_v17, %s2342_s6  ;;  %v376_v48 = vpack.c.bf16 %v374_v39, %v374_v39  ;;  %v1168_v28 = vmul.f32 %v2597_v41, %v2505_v63  ;;  %v1169_v55 = vmul.f32 %v2603_v7, %v2510_v2  ;;  %v1170_v52 = vmul.f32 %v2654_v40, %v2493_v57 }
  0x3a   : > { %v1695_v53 = vsel %vm993_vm7, %v1693_v38, %v2657_v42  ;;  %v377_v50 = vpack.c.bf16 %v375_v13, %v375_v13  ;;  %vm671_vm8 = vcmp.ne.s32.totalorder %v577_v46, 15  ;;  %v1149_v33 = vmul.f32 %v2597_v41, %v2515_v9 }
  0x3b   : > { %1702 = vrot.lane.b32.xlu1 %v1695_v53, %s2344_s13  ;;  %v386_v54 = vunpack.c.l.b16 %v376_v48  ;;  %v2674_v60 = vsel %vm671_vm8, 1.0, %v3359_v43  ;;  %v1177_v62 = vpack.c.bf16 %v1168_v28, %v1168_v28  ;;  %v1178_v4 = vpack.c.bf16 %v1169_v55, %v1169_v55 }
  0x3c   : > { %v387_v8 = vunpack.c.l.b16 %v377_v50  ;;  %v3358_v10 = vrot.slane %v2674_v60, 6  ;;  %v1179_v17 = vpack.c.bf16 %v1170_v52, %v1170_v52  ;;  %v1150_v19 = vmul.f32 %v2603_v7, %v2519_v16 }
  0x3d   : > { %v1303_v23 = vunpack.c.l.b16 %v1177_v62  ;;  %v1304_v27 = vunpack.c.l.b16 %v1178_v4  ;;  %v1151_v26 = vmul.f32 %v2654_v40, %v2534_v20  ;;  %v1158_v24 = vpack.c.bf16 %v1149_v33, %v1149_v33 }
  0x3e   : > { %v2684_v32 = vpack.c.b16 %v387_v8, %v386_v54  ;;  %v2690_v18 = vsel %vm771_vm5, %v2428_v11, %v3358_v10  ;;  %v1305_v36 = vunpack.c.l.b16 %v1179_v17  ;;  %v1159_v37 = vpack.c.bf16 %v1150_v19, %v1150_v19 }
  0x3f   : > { %v1171_v38 = vmul.f32 %v2690_v18, %v2495_v58  ;;  %v1311_v39 = vpack.c.b16 %v1304_v27, %v1303_v23  ;;  %v1152_v13 = vmul.f32 %v2690_v18, %v2536_v21  ;;  %v1160_v46 = vpack.c.bf16 %v1151_v26, %v1151_v26 }
  0x40   : > { %v474_v48 = vshrl.u32 %v2684_v32, 16  ;;  %v1263_v28 = vunpack.c.l.b16 %v1158_v24  ;;  %v1264_v55 = vunpack.c.l.b16 %v1159_v37  ;;  %v1588_v52 = vmul.f32 %v2483_v51, %v2654_v40 }
  0x41   : > { %v1180_v53 = vpack.c.bf16 %v1171_v38, %v1171_v38  ;;  %v2700_v50 = vrot.slane %v1311_v39, 1  ;;  %v1161_v33 = vpack.c.bf16 %v1152_v13, %v1152_v13  ;;  %v1265_v54 = vunpack.c.l.b16 %v1160_v46 }
  0x42   : > { %v476_v62 = vrot.slane %v474_v48, 7  ;;  %v1271_v4 = vpack.c.b16 %v1264_v55, %v1263_v28  ;;  %v1589_v8 = vmul.f32 %v2491_v56, %v2690_v18  ;;  %v1597_v17 = vpack.c.bf16 %v1588_v52, %v1588_v52 }
  0x43   : > { %3382 = vst [vmem:[#allocation4_spill] sm:$0xff] %v2700_v50  ;;  %v1306_v19 = vunpack.c.l.b16 %v1180_v53  ;;  %v1266_v23 = vunpack.c.l.b16 %v1161_v33  ;;  %v2707_v27 = vunpack.c.h.bf16 %v2579_v59  ;;  %v1569_v26 = vmul.f32 %v2654_v40, %v2587_v3 }
  0x44   : > { %v487_v24 = vsel %vm414_vm0, %v476_v62, %v486_v45  ;;  %v2712_v37 = vrot.slane %v1271_v4, 1  ;;  %v1598_v38 = vpack.c.bf16 %v1589_v8, %v1589_v8  ;;  %v1723_v39 = vunpack.c.l.b16 %v1597_v17 }
  0x45   : > { %3383 = vst [vmem:[#allocation5_spill] sm:$0xff] %v2707_v27  ;;  %v934_v13 = vshll.u32 %v487_v24, 16  ;;  %v938_v46 = vshrl.u32 %v487_v24, 16  ;;  %v1312_v48 = vpack.c.b16 %v1306_v19, %v1305_v36  ;;  %v1272_v28 = vpack.c.b16 %v1266_v23, %v1265_v54 }
  0x46   : > { %3384 = vst [vmem:[#allocation6_spill] sm:$0xff] %v2712_v37  ;;  %v2717_v55 = vunpack.c.l.bf16 %v487_v24  ;;  %v2719_v52 = vunpack.c.h.bf16 %v487_v24  ;;  %v1724_v53 = vunpack.c.l.b16 %v1598_v38  ;;  %v1570_v33 = vmul.f32 %v2707_v27, %v2690_v18  ;;  %v2229_v24 = vld [vmem:[%s263_s22] sm:$0xff]   ;;  %s313_s22 = sshll.u32 %s312_s14, 16 }
  0x47   : > { %v2725_v45 = vrot.slane %v934_v13, 1  ;;  %v2727_v4 = vrot.slane %v1312_v48, 1  ;;  %v2729_v8 = vrot.slane %v1272_v28, 1  ;;  %v1578_v36 = vpack.c.bf16 %v1569_v26, %v1569_v26  ;;  %s314_s5 = sor.u32 %s313_s22, %s312_s14 }
  0x48   : > { %3385 = vst [vmem:[#allocation7_spill] sm:$0xff] %v2719_v52  ;;  %v740_v54 = vmul.f32 %v2467_v44, %v2717_v55  ;;  %v741_v17 = vmul.f32 %v2719_v52, %v2423_v6  ;;  %v1730_v19 = vpack.c.b16 %v1724_v53, %v1723_v39  ;;  %v1579_v23 = vpack.c.bf16 %v1570_v33, %v1570_v33 }
  0x49   : > { %v940_v38 = vor.u32 %v938_v46, %v2725_v45  ;;  %v1319_v13 = vsel %vm993_vm7, %v2700_v50, %v2727_v4  ;;  %v1279_v26 = vsel %vm993_vm7, %v2712_v37, %v2729_v8  ;;  %v1683_v48 = vunpack.c.l.b16 %v1578_v36 }
  0x4a   : > { %1326 = vrot.lane.b32.xlu0 %v1319_v13, %s2343_s12  ;;  %1286 = vrot.lane.b32.xlu1 %v1279_v26, %s2344_s13  ;;  %v748_v28 = vpack.c.bf16 %v740_v54, %v740_v54  ;;  %v749_v10 = vpack.c.bf16 %v741_v17, %v741_v17  ;;  %v2744_v39 = vrot.slane %v1730_v19, 1  ;;  %v1684_v53 = vunpack.c.l.b16 %v1579_v23 }
  0x4b   : > { %v945_v46 = vsel %vm881_vm2, %v940_v38, %v2508_v0  ;;  %v477_v33 = vshll.u32 %v2684_v32, 16  ;;  %v2230_v43 = vunpack.c.l.bf16 %v2229_v24  ;;  %v2231_v23 = vunpack.c.h.bf16 %v2229_v24 }
  0x4c   : > { %964 = vrot.lane.b32.xlu2 %v945_v46, %s2340_s25  ;;  %v863_v36 = vunpack.c.l.b16 %v748_v28  ;;  %v2751_v13 = vunpack.c.l.b16 %v749_v10  ;;  %v1737_v54 = vsel %vm993_vm7, %v2641_v25, %v2744_v39  ;;  %v1690_v17 = vpack.c.b16 %v1684_v53, %v1683_v48 }
  0x4d   : > { %v479_v0 = vor.u32 %v477_v33, %v476_v62  ;;  %v296_v32 = vmul.f32 %v2230_v43, %v2643_v29  ;;  %v426_v38 = vshll.u32 %v2433_v14, 16  ;;  %v817_v25 = vmul.f32 %v2597_v41, %v2717_v55 }
  0x4e   : > { %3386 = vst [vmem:[#allocation8_spill] sm:$0xff] %v2751_v13  ;;  %v870_v10 = vpack.c.b16 %v2751_v13, %v863_v36  ;;  %v2767_v26 = vrot.slane %v1690_v17, 1  ;;  %v818_v62 = vmul.f32 %v2603_v7, %v2719_v52  ;;  %v297_v14 = vmul.f32 %v2231_v23, %v2643_v29 }
  0x4f   : > { %v527_v43 = vsel %vm2757_vm10, 0, %v479_v0  ;;  %v298_v24 = vpack.c.bf16 %v296_v32, %v296_v32  ;;  %v428_v48 = vor.u32 %v426_v38, %v2453_v34  ;;  %v826_v37 = vpack.c.bf16 %v817_v25, %v817_v25 }
  0x50   : > { %v1697_v28 = vsel %vm993_vm7, %v2657_v42, %v2767_v26  ;;  %v730_v53 = vunpack.c.l.bf16 %v527_v43  ;;  %v731_v46 = vunpack.c.h.bf16 %v527_v43  ;;  %v927_v33 = vshrl.u32 %v527_v43, 16 }
  0x51   : > { %v929_v36 = vshll.u32 %v527_v43, 16  ;;  %v299_v17 = vpack.c.bf16 %v297_v14, %v297_v14  ;;  %v326_v50 = vunpack.c.l.b16 %v298_v24  ;;  %v827_v38 = vpack.c.bf16 %v818_v62, %v818_v62 }
  0x52   : > { %1744 = vrot.lane.b32.xlu0 %v1737_v54, %s2343_s12  ;;  %1704 = vrot.lane.b32.xlu1 %v1697_v28, %s2344_s13  ;;  %v738_v34 = vmul.f32 %v2618_v12, %v730_v53  ;;  %v739_v29 = vmul.f32 %v731_v46, %v2423_v6  ;;  %v815_v42 = vmul.f32 %v2428_v11, %v730_v53  ;;  %v1022_v14 = vunpack.c.l.b16 %v826_v37 }
  0x53   : > { %v931_v0 = vrot.slane %v929_v36, 1  ;;  %v327_v23 = vunpack.c.l.b16 %v299_v17  ;;  %v816_v32 = vmul.f32 %v2592_v5, %v731_v46  ;;  %v1023_v44 = vunpack.c.l.b16 %v827_v38 }
  0x54   : > { %875 = vrot.lane.b32.xlu2 %v870_v10, %s2342_s6  ;;  %v746_v25 = vpack.c.bf16 %v738_v34, %v738_v34  ;;  %v747_v54 = vpack.c.bf16 %v739_v29, %v739_v29  ;;  %v824_v43 = vpack.c.bf16 %v815_v42, %v815_v42  ;;  %v819_v10 = vmul.f32 %v2654_v40, %v2505_v63 }
  0x55   : > { %v932_v24 = vor.u32 %v931_v0, %v927_v33  ;;  %v328_v28 = vpack.c.b16 %v327_v23, %v326_v50  ;;  %v825_v13 = vpack.c.bf16 %v816_v32, %v816_v32  ;;  %v820_v34 = vmul.f32 %v2690_v18, %v2510_v2 }
  0x56   : > { %v861_v53 = vunpack.c.l.b16 %v746_v25  ;;  %v862_v36 = vunpack.c.l.b16 %v747_v54  ;;  %v2797_v46 = vunpack.c.l.b16 %v824_v43  ;;  %v828_v29 = vpack.c.bf16 %v819_v10, %v819_v10 }
  0x57   : > { %v937_v37 = vsel %vm881_vm2, %v932_v24, %v2725_v45  ;;  %v416_v62 = vshrl.u32 %v328_v28, 16  ;;  %v419_v50 = vshll.u32 %v328_v28, 16  ;;  %v2803_v33 = vunpack.c.l.b16 %v825_v13 }
  0x58   : > { %v869_v17 = vpack.c.b16 %v862_v36, %v861_v53  ;;  %v800_v0 = vmul.f32 %v2654_v40, %v2515_v9  ;;  %v534_v23 = vadd.s32 32, %v2405_v1  ;;  %v1030_v13 = vpack.c.b16 %v1023_v44, %v1022_v14 }
  0x59   : > { %v418_v42 = vrot.slane %v416_v62, 7  ;;  %v1029_v45 = vpack.c.b16 %v2803_v33, %v2797_v46  ;;  %v829_v2 = vpack.c.bf16 %v820_v34, %v820_v34  ;;  %v1024_v25 = vunpack.c.l.b16 %v828_v29 }
  0x5a   : > { %962 = vrot.lane.b32.xlu1 %v937_v37, %s2340_s25  ;;  %v801_v40 = vmul.f32 %v2690_v18, %v2519_v16  ;;  %v809_v14 = vpack.c.bf16 %v800_v0, %v800_v0  ;;  %v570_v53 = vand.u32 15, %v534_v23  ;;  %v1035_v0 = vrot.slane %v1030_v13, 1 }
  0x5b   : > { %v421_v32 = vor.u32 %v419_v50, %v418_v42  ;;  %v429_v38 = vsel %vm414_vm0, %v418_v42, %v428_v48  ;;  %v1025_v48 = vunpack.c.l.b16 %v829_v2  ;;  %vm1073_vm1 = vcmask 392192  }
  0x5c   : > { %873 = vrot.lane.b32.xlu2 %v869_v17, %s2342_s6  ;;  %v890_v54 = vshll.u32 %v429_v38, 16  ;;  %v2824_v43 = vunpack.c.l.bf16 %v429_v38  ;;  %v894_v24 = vshrl.u32 %v429_v38, 16  ;;  %v2826_v28 = vunpack.c.h.bf16 %v429_v38 }
  0x5d   : > { %v2831_v44 = vsel %vm2757_vm10, 0, %v421_v32  ;;  %v1031_v33 = vpack.c.b16 %v1025_v48, %v1024_v25  ;;  %v810_v42 = vpack.c.bf16 %v801_v40, %v801_v40  ;;  %v983_v25 = vunpack.c.l.b16 %v809_v14 }
  0x5e   : > { %v883_v18 = vshrl.u32 %v2831_v44, 16  ;;  %v885_v36 = vshll.u32 %v2831_v44, 16  ;;  %v892_v46 = vrot.slane %v890_v54, 1  ;;  %v3367_v10 = vunpack.c.l.bf16 %v2831_v44  ;;  %v2233_v54 = vld [vmem:[%s273_s8] sm:$0xff]  }
  0x5f   : > { %v3366_v37 = vunpack.c.h.bf16 %v2831_v44  ;;  %v798_v62 = vmul.f32 %v2597_v41, %v2824_v43  ;;  %v799_v50 = vmul.f32 %v2603_v7, %v2826_v28  ;;  %vm638_vm11 = vcmp.ne.s32.totalorder %v570_v53, 0 }
  0x60   : > { %v887_v17 = vrot.slane %v885_v36, 1  ;;  %v896_v34 = vor.u32 %v894_v24, %v892_v46  ;;  %v796_v29 = vmul.f32 %v2428_v11, %v3367_v10  ;;  %v2856_v36 = vrot.slane %v1031_v33, 1 }
  0x61   : > { %v797_v41 = vmul.f32 %v2592_v5, %v3366_v37  ;;  %v807_v23 = vpack.c.bf16 %v798_v62, %v798_v62  ;;  %v808_v7 = vpack.c.bf16 %v799_v50, %v799_v50  ;;  %v984_v50 = vunpack.c.l.b16 %v810_v42 }
  0x62   : > { %v888_v2 = vor.u32 %v887_v17, %v883_v18  ;;  %v901_v32 = vsel %vm881_vm2, %v896_v34, %v2538_v22  ;;  %v805_v38 = vpack.c.bf16 %v796_v29, %v796_v29  ;;  %v3389_v18 = vmov 0.0  }
  0x63   : > { %920 = vrot.lane.b32.xlu1 %v901_v32, %s2341_s27  ;;  %v806_v40 = vpack.c.bf16 %v797_v41, %v797_v41  ;;  %v981_v24 = vunpack.c.l.b16 %v807_v23  ;;  %v982_v48 = vunpack.c.l.b16 %v808_v7  ;;  %v2863_v17 = vsel %vm638_vm11, 1.0, %v3389_v18 }
  0x64   : > { %v893_v13 = vsel %vm881_vm2, %v888_v2, %v892_v46  ;;  %v979_v62 = vunpack.c.l.b16 %v805_v38  ;;  %v2234_v34 = vunpack.c.l.bf16 %v2233_v54  ;;  %v1034_v29 = vrot.slane %v1029_v45, 1 }
  0x65   : > { %918 = vrot.lane.b32.xlu0 %v893_v13, %s2341_s27  ;;  %v980_v22 = vunpack.c.l.b16 %v806_v40  ;;  %v989_v14 = vpack.c.b16 %v982_v48, %v981_v24  ;;  %v1134_v33 = vmul.f32 %v2863_v17, %v2493_v57  ;;  %v2235_v41 = vunpack.c.h.bf16 %v2233_v54 }
  0x66   : > { %v315_v23 = vstv %s314_s5  ;;  %v1232_v53 = vshrl.u32 %v2579_v59, 16  ;;  %v1038_v2 = vsel %vm993_vm7, %v1035_v0, %v2856_v36  ;;  %v990_v32 = vpack.c.b16 %v984_v50, %v983_v25 }
  0x67   : > { %v988_v46 = vpack.c.b16 %v980_v22, %v979_v62  ;;  %v995_v7 = vrot.slane %v989_v14, 1  ;;  %v319_v42 = vunpack.c.l.bf16 %v315_v23  ;;  %v1142_v38 = vpack.c.bf16 %v1134_v33, %v1134_v33 }
  0x68   : > { %v537_v40 = vadd.s32 56, %v2405_v1  ;;  %v1036_v54 = vsel %vm993_vm7, %v1034_v29, %v1035_v0  ;;  %v2876_v13 = vor.u32 %v1232_v53, %v2609_v15  ;;  %v1137_v59 = vmul.f32 %v2491_v56, %v2423_v6 }
  0x69   : > { %v994_v45 = vrot.slane %v988_v46, 1  ;;  %v320_v24 = vmul.f32 %v2234_v34, %v319_v42  ;;  %v321_v48 = vmul.f32 %v2235_v41, %v319_v42  ;;  %v1552_v62 = vmul.f32 %v2863_v17, %v2483_v51  ;;  %v2241_v34 = vld [vmem:[%s369_s23] sm:$0xff]  }
  0x6a   : > { %v591_v14 = vand.u32 15, %v537_v40  ;;  %v2885_v0 = vrot.slane %v990_v32, 1  ;;  %v1216_v15 = vunpack.c.l.b16 %v1142_v38  ;;  %v3390_v29 = vrot.slane %v2674_v60, 6 }
  0x6b   : > { %v996_v25 = vsel %vm993_vm7, %v994_v45, %v995_v7  ;;  %1045 = vrot.lane.b32.xlu1 %v1038_v2, %s2343_s12  ;;  %v322_v50 = vpack.c.bf16 %v320_v24, %v320_v24  ;;  %v323_v22 = vpack.c.bf16 %v321_v48, %v321_v48  ;;  %v1145_v53 = vpack.c.bf16 %v1137_v59, %v1137_v59 }
  0x6c   : > { %1003 = vrot.lane.b32.xlu2 %v996_v25, %s2344_s13  ;;  %v2891_v33 = vsel %vm771_vm5, %v3390_v29, %v2428_v11  ;;  %vm673_vm12 = vcmp.ne.s32.totalorder %v591_v14, 15  ;;  %v2242_v38 = vunpack.c.l.bf16 %v2241_v34  ;;  %v1560_v60 = vpack.c.bf16 %v1552_v62, %v1552_v62 }
  0x6d   : > { %1043 = vrot.lane.b32.xlu0 %v1036_v54, %s2343_s12  ;;  %v351_v41 = vunpack.c.l.b16 %v322_v50  ;;  %v352_v23 = vunpack.c.l.b16 %v323_v22  ;;  %v1153_v46 = vmul.f32 %v2891_v33, %v2587_v3  ;;  %v2089_v2 = vsel %vm673_vm12, 1.0, %v3389_v18 }
  0x6e   : > { %v1172_v32 = vmul.f32 %v2483_v51, %v2891_v33  ;;  %v2899_v45 = vrot.slane %v2089_v2, 6  ;;  %v2243_v24 = vunpack.c.h.bf16 %v2241_v34  ;;  %v1222_v48 = vpack.c.b16 %v2553_v35, %v1216_v15 }
  0x6f   : > { %v353_v40 = vpack.c.b16 %v352_v23, %v351_v41  ;;  %v1162_v54 = vpack.c.bf16 %v1153_v46, %v1153_v46  ;;  %v380_v25 = vmul.f32 %v2242_v38, %v319_v42  ;;  %v998_v29 = vsel %vm993_vm7, %v995_v7, %v2885_v0 }
  0x70   : > { %v2905_v59 = vsel %vm771_vm5, %v2428_v11, %v2899_v45  ;;  %v1181_v14 = vpack.c.bf16 %v1172_v32, %v1172_v32  ;;  %v381_v15 = vmul.f32 %v2243_v24, %v319_v42  ;;  %v2913_v23 = vunpack.c.l.b16 %v1145_v53 }
  0x71   : > { %v455_v50 = vshrl.u32 %v353_v40, 16  ;;  %v458_v22 = vshll.u32 %v353_v40, 16  ;;  %v1154_v62 = vmul.f32 %v2707_v27, %v2905_v59  ;;  %v1173_v34 = vmul.f32 %v2491_v56, %v2905_v59 }
  0x72   : > { %v1634_v46 = vunpack.c.l.b16 %v1560_v60  ;;  %v382_v2 = vpack.c.bf16 %v380_v25, %v380_v25  ;;  %v1267_v40 = vunpack.c.l.b16 %v1162_v54  ;;  %v383_v37 = vpack.c.bf16 %v381_v15, %v381_v15 }
  0x73   : > { %v457_v41 = vrot.slane %v455_v50, 7  ;;  %v1163_v38 = vpack.c.bf16 %v1154_v62, %v1154_v62  ;;  %v1182_v32 = vpack.c.bf16 %v1173_v34, %v1173_v34  ;;  %v1307_v10 = vunpack.c.l.b16 %v1181_v14 }
  0x74   : > { %1228 = vrot.lane.b32.xlu2 %v1222_v48, %s2342_s6  ;;  %v411_v27 = vunpack.c.l.b16 %v382_v2  ;;  %v412_v56 = vunpack.c.l.b16 %v383_v37  ;;  %v1242_v42 = vshrl.u32 %v2472_v47, 16  ;;  %v1640_v60 = vpack.c.b16 %v2913_v23, %v1634_v46 }
  0x75   : > { %1005 = vrot.lane.b32.xlu0 %v998_v29, %s2344_s13  ;;  %v460_v7 = vor.u32 %v458_v22, %v457_v41  ;;  %v1268_v52 = vunpack.c.l.b16 %v1163_v38  ;;  %v1308_v35 = vunpack.c.l.b16 %v1182_v32  ;;  %v742_v24 = vmul.f32 %v2863_v17, %v2505_v63 }
  0x76   : > { %v802_v48 = vmul.f32 %v2891_v33, %v2534_v20  ;;  %v413_v50 = vpack.c.b16 %v412_v56, %v411_v27  ;;  %v803_v37 = vmul.f32 %v2905_v59, %v2536_v21  ;;  %v536_v14 = vadd.s32 48, %v2405_v1 }
  0x77   : > { %v2920_v53 = vsel %vm414_vm0, %v2550_v30, %v460_v7  ;;  %v1273_v25 = vpack.c.b16 %v1268_v52, %v1267_v40  ;;  %v1313_v47 = vpack.c.b16 %v1308_v35, %v1307_v10  ;;  %v1244_v34 = vor.u32 %v1242_v42, %v2503_v61 }
  0x78   : > { %v1236_v54 = vshll.u32 %v2920_v53, 16  ;;  %v2931_v22 = vunpack.c.l.bf16 %v2920_v53  ;;  %v1530_v30 = vunpack.c.h.bf16 %v2920_v53  ;;  %v513_v62 = vshrl.u32 %v413_v50, 16 }
  0x79   : > { %v2937_v63 = vrot.slane %v1273_v25, 1  ;;  %v516_v52 = vshll.u32 %v413_v50, 16  ;;  %v811_v10 = vpack.c.bf16 %v802_v48, %v802_v48  ;;  %v812_v61 = vpack.c.bf16 %v803_v37, %v803_v37 }
  0x7a   : > { %v2935_v29 = vrot.slane %v1236_v54, 1  ;;  %v1571_v27 = vmul.f32 %v2931_v22, %v2891_v33  ;;  %v1572_v35 = vmul.f32 %v1530_v30, %v2905_v59  ;;  %v2951_v46 = vrot.slane %v513_v62, 7 }
  0x7b   : > { %v1281_v15 = vsel %vm993_vm7, %v2729_v8, %v2937_v63  ;;  %v2955_v2 = vrot.slane %v1313_v47, 1  ;;  %v584_v32 = vand.u32 15, %v536_v14  ;;  %v821_v7 = vmul.f32 %v2891_v33, %v2493_v57 }
  0x7c   : > { %v1239_v1 = vsel %vm881_vm2, %v2876_v13, %v2935_v29  ;;  %v1580_v38 = vpack.c.bf16 %v1571_v27, %v1571_v27  ;;  %v1581_v40 = vpack.c.bf16 %v1572_v35, %v1572_v35  ;;  %1288 = vrot.lane.b32.xlu2 %v1281_v15, %s2344_s13  ;;  %v518_v13 = vor.u32 %v516_v52, %v2951_v46 }
  0x7d   : > { %1240 = vrot.lane.b32.xlu1 %v1239_v1, %s2341_s27  ;;  %1646 = vrot.lane.b32.xlu0 %v1640_v60, %s2342_s6  ;;  %v822_v8 = vmul.f32 %v2905_v59, %v2495_v58  ;;  %v2965_v56 = vsel %vm2757_vm10, %v457_v41, 0  ;;  %v750_v48 = vpack.c.bf16 %v742_v24, %v742_v24  ;;  %vm640_vm13 = vcmp.ne.s32.totalorder %v584_v32, 0 }
  0x7e   : > { %v1685_v42 = vunpack.c.l.b16 %v1580_v38  ;;  %v1686_v60 = vunpack.c.l.b16 %v1581_v40  ;;  %v2969_v54 = vsel %vm414_vm0, %v2447_v31, %v518_v13  ;;  %v985_v25 = vunpack.c.l.b16 %v811_v10 }
  0x7f   : > { %v986_v50 = vunpack.c.l.b16 %v812_v61  ;;  %v2972_v37 = vsel %vm640_vm13, 1.0, %v3389_v18  ;;  %v1246_v47 = vshll.u32 %v2969_v54, 16  ;;  %v1165_v14 = vunpack.c.l.bf16 %v2969_v54 }
  0x80   : > { %v1691_v58 = vpack.c.b16 %v1686_v60, %v1685_v42  ;;  %v1547_v41 = vunpack.c.h.bf16 %v2969_v54  ;;  %v1321_v24 = vsel %vm993_vm7, %v2727_v4, %v2955_v2  ;;  %v830_v62 = vpack.c.bf16 %v821_v7, %v821_v7 }
  0x81   : > { %v831_v52 = vpack.c.bf16 %v822_v8, %v822_v8  ;;  %v1248_v31 = vrot.slane %v1246_v47, 1  ;;  %v1590_v35 = vmul.f32 %v1165_v14, %v2891_v33  ;;  %v865_v10 = vunpack.c.l.b16 %v750_v48 }
  0x82   : > { %v2980_v27 = vrot.slane %v1691_v58, 1  ;;  %v1591_v18 = vmul.f32 %v1547_v41, %v2905_v59  ;;  %v991_v1 = vpack.c.b16 %v986_v50, %v985_v25  ;;  %v1136_v15 = vmul.f32 %v2972_v37, %v2483_v51 }
  0x83   : > { %v1249_v61 = vsel %vm881_vm2, %v1244_v34, %v1248_v31  ;;  %v1599_v38 = vpack.c.bf16 %v1590_v35, %v1590_v35  ;;  %v1026_v33 = vunpack.c.l.b16 %v830_v62  ;;  %v1027_v59 = vunpack.c.l.b16 %v831_v52 }
  0x84   : > { %v1699_v4 = vsel %vm993_vm7, %v2767_v26, %v2980_v27  ;;  %v1600_v40 = vpack.c.bf16 %v1591_v18, %v1591_v18  ;;  %v1554_v32 = vmul.f32 %v2972_v37, %v1165_v14  ;;  %v1555_v13 = vmul.f32 %v1547_v41, %v2423_v6 }
  0x85   : > { %1328 = vrot.lane.b32.xlu1 %v1321_v24, %s2343_s12  ;;  %1250 = vrot.lane.b32.xlu0 %v1249_v61, %s2340_s25  ;;  %v1725_v7 = vunpack.c.l.b16 %v1599_v38  ;;  %v1650_v34 = vshrl.u32 %v2920_v53, 16  ;;  %v1654_v42 = vshll.u32 %v2965_v56, 16  ;;  %v871_v26 = vpack.c.b16 %v2572_v49, %v865_v10 }
  0x86   : > { %1706 = vrot.lane.b32.xlu2 %v1699_v4, %s2344_s13  ;;  %v1726_v8 = vunpack.c.l.b16 %v1600_v40  ;;  %v2998_v60 = vrot.slane %v991_v1, 1  ;;  %v1564_v48 = vunpack.c.l.bf16 %v2965_v56  ;;  %v1155_v58 = vmul.f32 %v2931_v22, %v2899_v45 }
  0x87   : > { %v1652_v50 = vor.u32 %v1650_v34, %v2935_v29  ;;  %v1656_v47 = vrot.slane %v1654_v42, 1  ;;  %v1144_v41 = vpack.c.bf16 %v1136_v15, %v1136_v15  ;;  %v1032_v24 = vpack.c.b16 %v1027_v59, %v1026_v33  ;;  %v2221_v59 = vld [vmem:[%s3355_s2 + $0x58] sm:$0xff] }
  0x88   : > { %v1731_v25 = vpack.c.b16 %v1726_v8, %v1725_v7  ;;  %v1562_v62 = vpack.c.bf16 %v1554_v32, %v1554_v32  ;;  %v1174_v52 = vmul.f32 %v1165_v14, %v2899_v45  ;;  %v1563_v18 = vpack.c.bf16 %v1555_v13, %v1555_v13  ;;  %2244 = vmatpush.bf16.msra.mxu3 %v2221_v59 }
  0x89   : > { %v3006_v49 = vsel %vm881_vm2, %v1652_v50, %v1656_v47  ;;  %v1164_v10 = vpack.c.bf16 %v1155_v58, %v1155_v58  ;;  %v1000_v56 = vsel %vm993_vm7, %v2885_v0, %v2998_v60  ;;  %v528_v1 = vsel %vm2757_vm10, %v2951_v46, 0  ;;  %v2227_v0 = vld [vmem:[%s3355_s2 + $0x88] sm:$0xff]  ;;  %1430 = vmatpush.bf16.msra.mxu0 %v2221_v59 }
  0x8a   : > { %v1738_v35 = vrot.slane %v1731_v25, 1  ;;  %v1183_v29 = vpack.c.bf16 %v1174_v52, %v1174_v52  ;;  %v1583_v61 = vunpack.c.l.bf16 %v528_v1  ;;  %v1218_v14 = vunpack.c.l.b16 %v1144_v41  ;;  %1847 = vmatpush.bf16.msra.mxu2 %v2227_v0  ;;  %v3037_v25 = vpop.permute.xlu2 %968 }
  0x8b   : > { %v3018_v4 = vrot.slane %v1032_v24, 1  ;;  %v1636_v38 = vunpack.c.l.b16 %v1562_v62  ;;  %v1660_v40 = vshrl.u32 %v2969_v54, 16  ;;  %v1637_v19 = vunpack.c.l.b16 %v1563_v18  ;;  %v2226_v54 = vld [vmem:[%s3355_s2 + $0x80] sm:$0xff]  ;;  %v2220_v24 = vld [vmem:[%s3355_s2 + $0x50] sm:$0xff] }
  0x8c   : > { %v1739_v15 = vsel %vm993_vm7, %v2744_v39, %v1738_v35  ;;  %v1269_v46 = vunpack.c.l.b16 %v1164_v10  ;;  %v1573_v39 = vmul.f32 %v1564_v48, %v2899_v45  ;;  %v1664_v33 = vshll.u32 %v528_v1, 16  ;;  %2245 = vmatpush.bf16.msra.mxu3 %v2220_v24  ;;  %v2224_v1 = vld [vmem:[%s3355_s2 + $0x70] sm:$0xff] }
  0x8d   : > { %1746 = vrot.lane.b32.xlu1 %v1739_v15, %s2343_s12  ;;  %877 = vrot.lane.b32.xlu0 %v871_v26, %s2342_s6  ;;  %v1309_v32 = vunpack.c.l.b16 %v1183_v29  ;;  %v1662_v13 = vor.u32 %v1660_v40, %v1248_v31  ;;  %v1592_v7 = vmul.f32 %v1583_v61, %v2899_v45  ;;  %v1223_v34 = vpack.c.b16 %v2913_v23, %v1218_v14  ;;  %v2219_v15 = vld [vmem:[%s3355_s2 + $0x48] sm:$0xff] }
  0x8e   : > { %1007 = vrot.lane.b32.xlu2 %v1000_v56, %s2344_s13  ;;  %v1666_v8 = vrot.slane %v1664_v33, 1  ;;  %v1040_v42 = vsel %vm993_vm7, %v2856_v36, %v3018_v4  ;;  %v1641_v48 = vpack.c.b16 %v1637_v19, %v1636_v38  ;;  %v1274_v31 = vpack.c.b16 %v1269_v46, %v1269_v46  ;;  %1848 = vmatpush.bf16.msra.mxu2 %v2226_v54  ;;  %v2225_v36 = vld [vmem:[%s3355_s2 + $0x78] sm:$0xff] }
  0x8f   : > { %v1601_v26 = vpack.c.bf16 %v1592_v7, %v1592_v7  ;;  %v1582_v50 = vpack.c.bf16 %v1573_v39, %v1573_v39  ;;  %v1314_v58 = vpack.c.b16 %v1309_v32, %v1309_v32  ;;  %v744_v18 = vmul.f32 %v2972_v37, %v2493_v57  ;;  %1431 = vmatpush.bf16.msra.mxu0 %v2220_v24  ;;  %v2218_v39 = vld [vmem:[%s3355_s2 + $0x40] sm:$0xff] }
  0x90   : > { %v3040_v47 = vsel %vm881_vm2, %v1662_v13, %v1666_v8  ;;  %v1282_v62 = vrot.slane %v1274_v31, 1  ;;  %v804_v29 = vmul.f32 %v2899_v45, %v2587_v3  ;;  %2246 = vmatpush.bf16.msra.mxu3 %v2219_v15  ;;  %v823_v32 = vmul.f32 %v2483_v51, %v2899_v45  ;;  %v2217_v31 = vld [vmem:[%s3355_s2 + $0x38] sm:$0xff] }
  0x91   : > { %v1727_v41 = vunpack.c.l.b16 %v1601_v26  ;;  %v1687_v52 = vunpack.c.l.b16 %v1582_v50  ;;  %v1322_v10 = vrot.slane %v1314_v58, 1  ;;  %v752_v40 = vpack.c.bf16 %v744_v18, %v744_v18 }
  0x92   : > { %1849 = vmatpush.bf16.msra.mxu2 %v2225_v36  ;;  %v1283_v14 = vsel %vm993_vm7, %v2937_v63, %v1282_v62  ;;  %v813_v46 = vpack.c.bf16 %v804_v29, %v804_v29  ;;  %v3391_v63 = vunpack.c.l.bf16 %v2831_v44  ;;  %v3081_v59 = vpop.permute.xlu2 %1644  ;;  %v719_v13 = vmul.f32 %v2423_v6, %v2519_v16  ;;  %v3393_v62 = vld [vmem:[#allocation3_spill] sm:$0xff] }
  0x93   : > { %v1732_v23 = vpack.c.b16 %v1727_v41, %v1727_v41  ;;  %v1692_v38 = vpack.c.b16 %v1687_v52, %v1687_v52  ;;  %v1323_v19 = vsel %vm993_vm7, %v2955_v2, %v1322_v10  ;;  %v1130_v2 = vmul.f32 %v2618_v12, %v2717_v55  ;;  %1432 = vmatpush.bf16.msra.mxu0 %v2219_v15 }
  0x94   : > { %v714_v33 = vmul.f32 %v2618_v12, %v3391_v63  ;;  %v3392_v7 = vunpack.c.h.bf16 %v2831_v44  ;;  %v1147_v51 = vmul.f32 %v2428_v11, %v2824_v43  ;;  %v1148_v45 = vmul.f32 %v2592_v5, %v2826_v28  ;;  %2247 = vmatpush.bf16.msra.mxu3 %v2218_v39  ;;  %v3395_v63 = vld [vmem:[#allocation2_spill] sm:$0xff] }
  0x95   : > { %1230 = vrot.lane.b32.xlu1 %v1223_v34, %s2342_s6  ;;  %1047 = vrot.lane.b32.xlu0 %v1040_v42, %s2343_s12  ;;  %v1740_v56 = vrot.slane %v1732_v23, 1  ;;  %v1700_v34 = vrot.slane %v1692_v38, 1  ;;  %v867_v42 = vunpack.c.l.b16 %v752_v40  ;;  %v1531_v44 = vmul.f32 %v2618_v12, %v2515_v9  ;;  %v2216_v38 = vld [vmem:[%s3355_s2 + $0x30] sm:$0xff]  ;;  %v3394_v40 = vld [vmem:[#allocation7_spill] sm:$0xff] }
  0x96   : > { %1648 = vrot.lane.b32.xlu2 %v1641_v48, %s2342_s6  ;;  %1850 = vmatpush.bf16.msra.mxu2 %v2224_v1  ;;  %v715_v54 = vmul.f32 %v2423_v6, %v3392_v7  ;;  %v722_v8 = vpack.c.bf16 %v714_v33, %v714_v33  ;;  %v2222_v48 = vld [vmem:[%s3355_s2 + $0x60] sm:$0xff]  ;;  %v1138_v50 = vpack.c.bf16 %v1130_v2, %v1130_v2  ;;  %vm1082_vm0 = vcmask 523264  }
  0x97   : > { %v3062_v61 = vsel %vm993_vm7, %v1738_v35, %v1740_v56  ;;  %v3064_v57 = vpop.permute.xlu1 %966  ;;  %v2223_v35 = vld [vmem:[%s3355_s2 + $0x68] sm:$0xff]  ;;  %1433 = vmatpush.bf16.msra.mxu0 %v2218_v39  ;;  %v832_v58 = vpack.c.bf16 %v823_v32, %v823_v32  ;;  %v727_v41 = vpack.c.bf16 %v719_v13, %v719_v13  ;;  %v1539_v36 = vpack.c.bf16 %v1531_v44, %v1531_v44 }
  0x98   : > { %v723_v26 = vpack.c.bf16 %v715_v54, %v715_v54  ;;  %v3100_v16 = vunpack.c.l.b16 %v722_v8  ;;  %v1701_v24 = vsel %vm993_vm7, %v2980_v27, %v1700_v34  ;;  %v872_v52 = vpack.c.b16 %v3393_v62, %v867_v42  ;;  %2248 = vmatpush.bf16.msra.mxu3 %v2217_v31  ;;  %v2214_v54 = vld [vmem:[%s3355_s2 + $0x20] sm:$0xff]  ;;  %v3396_v42 = vld [vmem:[#allocation8_spill] sm:$0xff] }
  0x99   : > { %v1156_v18 = vpack.c.bf16 %v1147_v51, %v1147_v51  ;;  %v1157_v10 = vpack.c.bf16 %v1148_v45, %v1148_v45  ;;  %v1166_v27 = vmul.f32 %v2428_v11, %v2717_v55  ;;  %v3131_v39 = vunpack.c.l.b16 %v727_v41  ;;  %v2215_v11 = vld [vmem:[%s3355_s2 + $0x28] sm:$0xff] }
  0x9a   : > { %1851 = vmatpush.bf16.msra.mxu2 %v2223_v35  ;;  %v3110_v23 = vunpack.c.l.b16 %v723_v26  ;;  %v1028_v35 = vunpack.c.l.b16 %v832_v58  ;;  %v1115_v33 = vmul.f32 %v3395_v63, %v2515_v9  ;;  %1503 = vmatpush.bf16.msra.mxu1 %v2215_v11  ;;  %v721_v58 = vmul.f32 %v2423_v6, %v2536_v21  ;;  %v3398_v11 = vld [vmem:[#allocation4_spill] sm:$0xff] }
  0x9b   : > { %v3068_v0 = vpop.permute.xlu0 %922  ;;  %1434 = vmatpush.bf16.msra.mxu0 %v2217_v31  ;;  %v1261_v55 = vunpack.c.l.b16 %v1156_v18  ;;  %v1262_v2 = vunpack.c.l.b16 %v1157_v10  ;;  %v1175_v32 = vpack.c.bf16 %v1166_v27, %v1166_v27  ;;  %vm1091_vm2 = vcmask 654336  }
  0x9c   : > { %v849_v15 = vpack.c.b16 %v3110_v23, %v3100_v16  ;;  %2249 = vmatpush.bf16.msra.mxu3 %v2216_v38  ;;  %v1123_v45 = vpack.c.bf16 %v1115_v33, %v1115_v33  ;;  %vm1419_vm3 = vcmask 785408   ;;  %v2212_v33 = vld [vmem:[%s3355_s2 + $0x10] sm:$0xff]  ;;  %vm1910_vm4 = vcmask 125952  }
  0x9d   : > { %1658 = vrot.lane.b32.xlu1 %v3006_v49, %s2341_s27  ;;  %1290 = vrot.lane.b32.xlu0 %v1283_v14, %s2344_s13  ;;  %v987_v49 = vunpack.c.l.b16 %v813_v46  ;;  %v1610_v14 = vunpack.c.l.b16 %v1539_v36  ;;  %v1212_v46 = vunpack.c.l.b16 %v1138_v50  ;;  %v1301_v8 = vunpack.c.l.b16 %v1175_v32 }
  0x9e   : > { %1330 = vrot.lane.b32.xlu2 %v1323_v19, %s2343_s12  ;;  %1852 = vmatpush.bf16.msra.mxu2 %v2222_v48  ;;  %v1167_v19 = vmul.f32 %v2592_v5, %v3394_v40  ;;  %v1743_v5 = vpop.permute.xlu2 %1742  ;;  %v1270_v26 = vpack.c.b16 %v1262_v2, %v1261_v55  ;;  %v1533_v36 = vmul.f32 %v3395_v63, %v2534_v20 }
  0x9f   : > { %v992_v29 = vpack.c.b16 %v987_v49, %v987_v49  ;;  %v3117_v1 = vpop.permute.xlu1 %1226  ;;  %1435 = vmatpush.bf16.msra.mxu0 %v2216_v38  ;;  %v1220_v51 = vpack.c.b16 %v3396_v42, %v1212_v46  ;;  %v1033_v49 = vpack.c.b16 %v1028_v35, %v1028_v35  ;;  %1504 = vmatpush.bf16.msra.mxu1 %v2214_v54  ;;  %v3397_v46 = vld [vmem:[#allocation6_spill] sm:$0xff] }
  0xa0   : > { %v1176_v13 = vpack.c.bf16 %v1167_v19, %v1167_v19  ;;  %v729_v38 = vpack.c.bf16 %v721_v58, %v721_v58  ;;  %v1541_v27 = vpack.c.bf16 %v1533_v36, %v1533_v36  ;;  %v2210_v54 = vld [vmem:[%s3355_s2] sm:$0xff] }
  0xa1   : > { %v1001_v7 = vrot.slane %v992_v29, 1  ;;  %v1041_v21 = vrot.slane %v1033_v49, 1 }
  0xa2   : > { %v1302_v34 = vunpack.c.l.b16 %v1176_v13  ;;  %v3177_v55 = vunpack.c.l.b16 %v729_v38  ;;  %v1612_v2 = vunpack.c.l.b16 %v1541_v27  ;;  %v2211_v13 = vld [vmem:[%s3355_s2 + $0x8] sm:$0xff] }
  0xa3   : > { %v3115_v56 = vpop.permute.xlu0 %924  ;;  %v1002_v48 = vsel %vm993_vm7, %v2998_v60, %v1001_v7  ;;  %v1194_v60 = vunpack.c.l.b16 %v1123_v45  ;;  %v1042_v19 = vsel %vm993_vm7, %v3018_v4, %v1041_v21 }
  0xa4   : > { %v1310_v50 = vpack.c.b16 %v1302_v34, %v1301_v8  ;;  %v1619_v7 = vpack.c.b16 %v3177_v55, %v1612_v2  ;;  %v3399_v2 = vld [vmem:[#allocation5_spill] sm:$0xff] }
  0xa5   : > { %1708 = vrot.lane.b32.xlu1 %v1701_v24, %s2344_s13  ;;  %1668 = vrot.lane.b32.xlu0 %v3040_v47, %s2340_s25  ;;  %v1618_v47 = vpack.c.b16 %v3131_v39, %v1610_v14  ;;  %v1201_v40 = vpack.c.b16 %v3131_v39, %v1194_v60 }
  0xa6   : > { %879 = vrot.lane.b32.xlu2 %v872_v52, %s2342_s6  ;;  %v1275_v52 = vrot.slane %v1270_v26, 1  ;;  %v1315_v29 = vrot.slane %v1310_v50, 1  ;;  %v3164_v14 = vpop.permute.xlu2 %964 }
  0xa7   : > { %v1337_v4 = vsel %vm1051_vm14, %v1201_v40, %v3117_v1 }
  0xa8   : > { %v1277_v35 = vsel %vm993_vm7, %v1275_v52, %v3397_v46  ;;  %v1345_v32 = vsel %vm1064_vm15, %v1337_v4, %v3068_v0  ;;  %v1120_v4 = vmul.f32 %v3399_v2, %v2423_v6 }
  0xa9   : > { %v1350_v34 = vsel %vm1073_vm1, %v1345_v32, %v3064_v57  ;;  %v1535_v32 = vmul.f32 %v2863_v17, %v2587_v3 }
  0xab   : > { %v1643_v44 = vpop.permute.xlu0 %1642 }
  0xac   : > { %v1752_v31 = vsel %vm1051_vm14, %v1618_v47, %v1643_v44 }
  0xad   : > { %v1762_v41 = vsel %vm1064_vm15, %v1752_v31, %v3068_v0  ;;  %1748 = vrot.lane.b32.xlu1 %v3062_v61, %s2343_s12  ;;  %1224 = vrot.lane.b32.xlu0 %v1220_v51, %s2342_s6  ;;  %v1703_v24 = vpop.permute.xlu1 %1702  ;;  %v2213_v61 = vld [vmem:[%s3355_s2 + $0x18] sm:$0xff]  ;;  %v1755_v51 = vsel %vm1051_vm14, %v1619_v7, %v3081_v59 }
  0xae   : > { %v1767_v62 = vsel %vm1073_vm1, %v1762_v41, %v3064_v57  ;;  %1009 = vrot.lane.b32.xlu2 %v1002_v48, %s2344_s13  ;;  %1505 = vmatpush.bf16.msra.mxu1 %v2213_v61  ;;  %v876_v47 = vpop.permute.xlu2 %875  ;;  %v1763_v49 = vsel %vm1064_vm15, %v1755_v51, %v3115_v56 }
  0xaf   : > { %v1773_v18 = vsel %vm1082_vm0, %v1767_v62, %v1703_v24  ;;  %v1768_v44 = vsel %vm1073_vm1, %v1763_v49, %v3037_v25  ;;  %v716_v24 = vmul.f32 %v3395_v63, %v2824_v43  ;;  %v717_v62 = vmul.f32 %v2423_v6, %v2826_v28 }
  0xb0   : > { %v1781_v10 = vsel %vm1091_vm2, %v1773_v18, %v1743_v5  ;;  %v1317_v5 = vsel %vm993_vm7, %v1315_v29, %v3398_v11  ;;  %v1117_v63 = vmul.f32 %v2863_v17, %v2534_v20 }
  0xb1   : > { %2194 = vmatmul.msk.bf16.vlgmr.msra.gmra.mxu2 %vm1419_vm3, %v1781_v10  ;;  %v724_v10 = vpack.c.bf16 %v716_v24, %v716_v24  ;;  %v725_v29 = vpack.c.bf16 %v717_v62, %v717_v62 }
  0xb2   : > { %1506 = vmatpush.bf16.msra.mxu1 %v2212_v33 }
  0xb3   : > { %v843_v23 = vunpack.c.l.b16 %v724_v10 }
  0xb5   : > { %1049 = vrot.lane.b32.xlu1 %v1042_v19, %s2343_s12  ;;  %1284 = vrot.lane.b32.xlu0 %v1277_v35, %s2344_s13  ;;  %v1125_v19 = vpack.c.bf16 %v1117_v63, %v1117_v63  ;;  %s2037_s13 = sshll.u32 %s3411_s16, 5 }
  0xb6   : > { %1324 = vrot.lane.b32.xlu2 %v1317_v5, %s2343_s12  ;;  %1507 = vmatpush.bf16.msra.mxu1 %v2211_v13  ;;  %v874_v31 = vpop.permute.xlu2 %873  ;;  %s2036_s12 = sshll.u32 %s2320_s15, 3 }
  0xb7   : > { %v1054_v36 = vsel %vm1051_vm14, %v849_v15, %v874_v31  ;;  %v3220_v15 = vunpack.c.l.b16 %v725_v29  ;;  %v1196_v11 = vunpack.c.l.b16 %v1125_v19  ;;  %p234_p12 = scmp.lt.s32.totalorder %s2036_s12, 31 }
  0xb9   : > { %v850_v40 = vpack.c.b16 %v3220_v15, %v843_v23  ;;  %v1202_v13 = vpack.c.b16 %v3177_v55, %v1196_v11  ;;  %s3421_s12 = smov (!%p234_p12, %s2036_s12), 31 }
  0xba   : > { %1508 = vmatpush.bf16.msra.mxu1 %v2210_v54  ;;  %s237_s9 = sadd.s32 %s2037_s13, %s3421_s12 }
  0xbb   : > { %v1057_v33 = vsel %vm1051_vm14, %v850_v40, %v876_v47  ;;  %v1543_v47 = vpack.c.bf16 %v1535_v32, %v1535_v32  ;;  %s2038_s10 = sshll.u32 %s237_s9, 2 }
  0xbc   : > { %v1327_v8 = vpop.permute.xlu0 %1326  ;;  %v1287_v1 = vpop.permute.xlu1 %1286  ;;  %s3318_s14 = scalar_lea.vmem %s3357_s4, %s2038_s10 }
  0xbd   : > { %v1357_v42 = vsel %vm1082_vm0, %v1350_v34, %v1287_v1  ;;  %v1128_v1 = vpack.c.bf16 %v1120_v4, %v1120_v4 }
  0xbe   : > { %v1365_v45 = vsel %vm1091_vm2, %v1357_v42, %v1327_v8 }
  0xbf   : > { %2127 = vmatmul.msk.bf16.vlgmr.msra.gmra.mxu3 %vm1419_vm3, %v1365_v45  ;;  %v1199_v49 = vunpack.c.l.b16 %v1128_v1 }
  0xc4   : > { %v1745_v26 = vpop.permute.xlu0 %1744  ;;  %v1705_v48 = vpop.permute.xlu1 %1704 }
  0xc5   : > { %v1775_v50 = vsel %vm1082_vm0, %v1768_v44, %v1705_v48  ;;  %v718_v44 = vmul.f32 %v2863_v17, %v2515_v9  ;;  %v1119_v17 = vmul.f32 %v2972_v37, %v2587_v3 }
  0xc6   : > { %v1783_v58 = vsel %vm1091_vm2, %v1775_v50, %v1745_v26  ;;  %v1004_v59 = vpop.permute.xlu2 %1003  ;;  %v1614_v26 = vunpack.c.l.b16 %v1543_v47 }
  0xc7   : > { %2195 = vmatmul.msk.bf16.gmra.mxu2 %vm1419_vm3, %v1783_v58  ;;  %v726_v50 = vpack.c.bf16 %v718_v44, %v718_v44  ;;  %v1127_v29 = vpack.c.bf16 %v1119_v17, %v1119_v17 }
  0xc8   : > { %v1620_v31 = vpack.c.b16 %v1199_v49, %v1614_v26 }
  0xc9   : > { %v845_v9 = vunpack.c.l.b16 %v726_v50  ;;  %v1198_v3 = vunpack.c.l.b16 %v1127_v29 }
  0xcb   : > { %v851_v10 = vpack.c.b16 %v3131_v39, %v845_v9  ;;  %v1203_v39 = vpack.c.b16 %v1199_v49, %v1198_v3 }
  0xcc   : > { %v963_v41 = vpop.permute.xlu1 %962 }
  0xce   : > { %v1229_v21 = vpop.permute.xlu2 %1228 }
  0xcf   : > { %v1340_v51 = vsel %vm1051_vm14, %v1202_v13, %v1229_v21 }
  0xd0   : > { %v1346_v48 = vsel %vm1064_vm15, %v1340_v51, %v3115_v56 }
  0xd1   : > { %v1351_v58 = vsel %vm1073_vm1, %v1346_v48, %v3037_v25 }
  0xd5   : > { %v3216_v18 = vpop.permute.xlu1 %920 }
  0xd6   : > { %v1289_v27 = vpop.permute.xlu2 %1288  ;;  %v1068_v5 = vsel %vm1064_vm15, %v1057_v33, %v3216_v18 }
  0xd7   : > { %v919_v60 = vpop.permute.xlu0 %918  ;;  %v1077_v7 = vsel %vm1073_vm1, %v1068_v5, %v3164_v14  ;;  %v1538_v5 = vmul.f32 %v1530_v30, %v2423_v6 }
  0xd8   : > { %v1066_v52 = vsel %vm1064_vm15, %v1054_v36, %v919_v60 }
  0xd9   : > { %v1075_v61 = vsel %vm1073_vm1, %v1066_v52, %v963_v41  ;;  %v1546_v32 = vpack.c.bf16 %v1538_v5, %v1538_v5 }
  0xda   : > { %v1084_v16 = vsel %vm1082_vm0, %v1075_v61, %v1004_v59  ;;  %v1359_v59 = vsel %vm1082_vm0, %v1351_v58, %v1289_v27 }
  0xdb   : > { %v1617_v30 = vunpack.c.l.b16 %v1546_v32 }
  0xdd   : > { %v1046_v46 = vpop.permute.xlu1 %1045 }
  0xdf   : > { %v1044_v38 = vpop.permute.xlu0 %1043 }
  0xe0   : > { %v1093_v28 = vsel %vm1091_vm2, %v1084_v16, %v1044_v38  ;;  %v1707_v54 = vpop.permute.xlu2 %1706 }
  0xe1   : > { %2154 = vmatmul.msk.bf16.vlgmr.msra.gmra.mxu1 %vm1419_vm3, %v1093_v28 }
  0xe7   : > { %v1006_v35 = vpop.permute.xlu0 %1005 }
  0xe8   : > { %v1086_v8 = vsel %vm1082_vm0, %v1077_v7, %v1006_v35  ;;  %v1008_v41 = vpop.permute.xlu2 %1007 }
  0xe9   : > { %v1095_v45 = vsel %vm1091_vm2, %v1086_v8, %v1046_v46  ;;  %v720_v8 = vmul.f32 %v2972_v37, %v2534_v20 }
  0xeb   : > { %v728_v47 = vpack.c.bf16 %v720_v8, %v720_v8 }
  0xed   : > { %v847_v26 = vunpack.c.l.b16 %v728_v47 }
  0xef   : > { %v1241_v34 = vpop.permute.xlu1 %1240  ;;  %v1647_v42 = vpop.permute.xlu0 %1646 }
  0xf0   : > { %v1758_v62 = vsel %vm1051_vm14, %v1620_v31, %v1647_v42  ;;  %v1649_v23 = vpop.permute.xlu2 %1648 }
  0xf1   : > { %2155 = vmatmul.msk.bf16.gmra.mxu1 %vm1419_vm3, %v1095_v45  ;;  %v1764_v21 = vsel %vm1064_vm15, %v1758_v62, %v1241_v34 }
  0xf7   : > { %v1329_v36 = vpop.permute.xlu1 %1328  ;;  %v1251_v60 = vpop.permute.xlu0 %1250 }
  0xf8   : > { %v1367_v24 = vsel %vm1091_vm2, %v1359_v59, %v1329_v36  ;;  %v1769_v52 = vsel %vm1073_vm1, %v1764_v21, %v1251_v60  ;;  %v1331_v2 = vpop.permute.xlu2 %1330 }
  0xf9   : > { %2128 = vmatmul.msk.bf16.gmra.mxu3 %vm1419_vm3, %v1367_v24  ;;  %v1777_v16 = vsel %vm1082_vm0, %v1769_v52, %v1707_v54 }
  0xff   : > { %v1747_v61 = vpop.permute.xlu1 %1746  ;;  %v878_v38 = vpop.permute.xlu0 %877 }
 0x100   : > { %v1060_v63 = vsel %vm1051_vm14, %v851_v10, %v878_v38  ;;  %v1785_v28 = vsel %vm1091_vm2, %v1777_v16, %v1747_v61 }
 0x101   : > { %v1070_v27 = vsel %vm1064_vm15, %v1060_v63, %v3068_v0  ;;  %2196 = vmatmul.msk.bf16.gmra.mxu2 %vm1419_vm3, %v1785_v28  ;;  %v1537_v0 = vmul.f32 %v2972_v37, %v2931_v22  ;;  %v1113_v22 = vmul.f32 %v2618_v12, %v2824_v43  ;;  %v852_v12 = vpack.c.b16 %v3177_v55, %v847_v26  ;;  %v2297_v28 = vld [vmem:[%s3356_s3] ss:$0 sm:$0xff] }
 0x102   : > { %v1079_v40 = vsel %vm1073_vm1, %v1070_v27, %v3064_v57 }
 0x103   : > { %v1088_v35 = vsel %vm1082_vm0, %v1079_v40, %v1008_v41  ;;  %v1545_v4 = vpack.c.bf16 %v1537_v0, %v1537_v0  ;;  %v1121_v42 = vpack.c.bf16 %v1113_v22, %v1113_v22 }
 0x105   : > { %v1616_v6 = vunpack.c.l.b16 %v1545_v4  ;;  %v1192_v44 = vunpack.c.l.b16 %v1121_v42 }
 0x107   : > { %v1231_v19 = vpop.permute.xlu1 %1230  ;;  %v1048_v46 = vpop.permute.xlu0 %1047  ;;  %v1621_v51 = vpack.c.b16 %v1617_v30, %v1616_v6  ;;  %v1200_v48 = vpack.c.b16 %v3220_v15, %v1192_v44 }
 0x108   : > { %v1097_v33 = vsel %vm1091_vm2, %v1088_v35, %v1048_v46  ;;  %v1343_v11 = vsel %vm1051_vm14, %v1203_v39, %v1231_v19 }
 0x109   : > { %2156 = vmatmul.msk.bf16.gmra.mxu1 %vm1419_vm3, %v1097_v33  ;;  %v1348_v57 = vsel %vm1064_vm15, %v1343_v11, %v1241_v34  ;;  %v880_v34 = vpop.permute.xlu2 %879  ;;  %v1761_v20 = vsel %vm1051_vm14, %v1621_v51, %v1649_v23 }
 0x10a   : > { %v1353_v7 = vsel %vm1073_vm1, %v1348_v57, %v1251_v60  ;;  %v1063_v41 = vsel %vm1051_vm14, %v852_v12, %v880_v34 }
 0x10b   : > { %v1072_v55 = vsel %vm1064_vm15, %v1063_v41, %v3115_v56 }
 0x10c   : > { %v1081_v15 = vsel %vm1073_vm1, %v1072_v55, %v3037_v25 }
 0x10f   : > { %v1659_v13 = vpop.permute.xlu1 %1658  ;;  %v1291_v54 = vpop.permute.xlu0 %1290 }
 0x110   : > { %v1361_v1 = vsel %vm1082_vm0, %v1353_v7, %v1291_v54  ;;  %v1766_v37 = vsel %vm1064_vm15, %v1761_v20, %v1659_v13 }
 0x111   : > { %v1369_v53 = vsel %vm1091_vm2, %v1361_v1, %v1331_v2  ;;  %v1010_v31 = vpop.permute.xlu2 %1009 }
 0x112   : > { %2129 = vmatmul.msk.bf16.gmra.mxu3 %vm1419_vm3, %v1369_v53  ;;  %v1090_v9 = vsel %vm1082_vm0, %v1081_v15, %v1010_v31 }
 0x117   : > { %v1709_v45 = vpop.permute.xlu1 %1708  ;;  %v1669_v49 = vpop.permute.xlu0 %1668 }
 0x118   : > { %v1771_v43 = vsel %vm1073_vm1, %v1766_v37, %v1669_v49 }
 0x119   : > { %v1779_v59 = vsel %vm1082_vm0, %v1771_v43, %v1709_v45  ;;  %v1325_v62 = vpop.permute.xlu2 %1324 }
 0x11f   : > { %v1749_v50 = vpop.permute.xlu1 %1748  ;;  %v1225_v58 = vpop.permute.xlu0 %1224 }
 0x120   : > { %v1334_v36 = vsel %vm1051_vm14, %v1200_v48, %v1225_v58  ;;  %v1787_v60 = vsel %vm1091_vm2, %v1779_v59, %v1749_v50 }
 0x121   : > { %v1344_v24 = vsel %vm1064_vm15, %v1334_v36, %v3216_v18  ;;  %2197 = vmatmul.msk.bf16.gmra.mxu2 %vm1419_vm3, %v1787_v60 }
 0x122   : > { %v1349_v21 = vsel %vm1073_vm1, %v1344_v24, %v3164_v14 }
 0x127   : > { %v1050_v17 = vpop.permute.xlu1 %1049  ;;  %v1285_v52 = vpop.permute.xlu0 %1284 }
 0x128   : > { %v1355_v18 = vsel %vm1082_vm0, %v1349_v21, %v1285_v52  ;;  %v1099_v10 = vsel %vm1091_vm2, %v1090_v9, %v1050_v17 }
 0x129   : > { %2157 = vmatmul.msk.bf16.gmra.mxu1 %vm1419_vm3, %v1099_v10  ;;  %v1363_v56 = vsel %vm1091_vm2, %v1355_v18, %v1325_v62 }
 0x12a   : > { %2126 = vmatmul.msk.bf16.vlgmr.msra.gmra.mxu0 %vm1419_vm3, %v1363_v56 }
 0x134   : > { %v1854_v25 = vpop.f32.mrf.mxu2 }
 0x13c   : > { %v3306_v61 = vpop.f32.mrf.mxu2 }
 0x142   : > { %v1442_v14 = vpop.f32.mrf.mxu3 }
 0x14a   : > { %v1859_v16 = vpop.f32.mrf.mxu2  ;;  %v1444_v39 = vpop.f32.mrf.mxu3 }
 0x152   : > { %v1861_v33 = vpop.f32.mrf.mxu2 }
 0x15e   : > { %v1510_v29 = vpop.f32.mrf.mxu1 }
 0x166   : > { %v3309_v38 = vpop.f32.mrf.mxu1 }
 0x16e   : > { %v1515_v23 = vpop.f32.mrf.mxu1 }
 0x16f   : > { %v1516_v63 = vadd.f32 %v1515_v23, %v1442_v14 }
 0x171   : > { %v1876_v27 = vadd.f32 %v1859_v16, %v1516_v63 }
 0x173   : > { %v1888_v3 = vadd.f32 %v2297_v28, %v1876_v27 }
 0x175   : > { %v1896_v40 = vmax.f32 %v1888_v3, 0.0 }
 0x176   : > { %v1517_v19 = vpop.f32.mrf.mxu1 }
 0x177   : > { %v1904_v46 = vpack.c.bf16 %v1896_v40, %v1896_v40  ;;  %v1518_v35 = vadd.f32 %v1517_v19, %v1444_v39 }
 0x179   : > { %1913 = vst.msk [vmem:[%s3318_s14 + $0x8] sm:$0xf] %vm1910_vm4, %v1904_v46  ;;  %v1877_v11 = vadd.f32 %v1861_v33, %v1518_v35 }
 0x17b   : > { %v1889_v0 = vadd.f32 %v2297_v28, %v1877_v11 }
 0x17c   : > { %v1447_v57 = vpop.f32.mrf.mxu3 }
 0x17d   : > { %v1897_v5 = vmax.f32 %v1889_v0, 0.0 }
 0x17f   : > { %v1905_v2 = vpack.c.bf16 %v1897_v5, %v1897_v5 }
 0x181   : > { %1914 = vst.msk [vmem:[%s3318_s14 + $0xc] sm:$0xf] %vm1910_vm4, %v1905_v2 }
 0x184   : > { %v1864_v4 = vpop.f32.mrf.mxu2  ;;  %v1449_v1 = vpop.f32.mrf.mxu3 }
 0x186   : > { %v1520_v32 = vpop.f32.mrf.mxu1 }
 0x187   : > { %v1521_v13 = vadd.f32 %v1520_v32, %v1447_v57 }
 0x189   : > { %v1878_v7 = vadd.f32 %v1864_v4, %v1521_v13 }
 0x18b   : > { %v1890_v54 = vadd.f32 %v2297_v28, %v1878_v7 }
 0x18c   : > { %v1866_v30 = vpop.f32.mrf.mxu2 }
 0x18d   : > { %v1898_v8 = vmax.f32 %v1890_v54, 0.0 }
 0x18e   : > { %v1522_v22 = vpop.f32.mrf.mxu1 }
 0x18f   : > { %v1906_v53 = vpack.c.bf16 %v1898_v8, %v1898_v8  ;;  %v1523_v6 = vadd.f32 %v1522_v22, %v1449_v1 }
 0x191   : > { %1915 = vst.msk [vmem:[%s3318_s14 + $0x10] sm:$0xf] %vm1910_vm4, %v1906_v53  ;;  %v1879_v47 = vadd.f32 %v1866_v30, %v1523_v6 }
 0x193   : > { %v1891_v34 = vadd.f32 %v2297_v28, %v1879_v47 }
 0x195   : > { %v1899_v42 = vmax.f32 %v1891_v34, 0.0  ;;  %v1452_v45 = vpop.f32.mrf.mxu3 }
 0x197   : > { %v1907_v51 = vpack.c.bf16 %v1899_v42, %v1899_v42 }
 0x199   : > { %1916 = vst.msk [vmem:[%s3318_s14 + $0x14] sm:$0xf] %vm1910_vm4, %v1907_v51 }
 0x19d   : > { %v1454_v58 = vpop.f32.mrf.mxu3 }
 0x1a4   : > { %v1869_v49 = vpop.f32.mrf.mxu2 }
 0x1a6   : > { %v1525_v26 = vpop.f32.mrf.mxu1 }
 0x1a7   : > { %v1526_v44 = vadd.f32 %v1525_v26, %v1452_v45  ;;  %v1437_v20 = vpop.f32.mrf.mxu0 }
 0x1a8   : > { %v1511_v37 = vadd.f32 %v1510_v29, %v1437_v20 }
 0x1a9   : > { %v1880_v12 = vadd.f32 %v1869_v49, %v1526_v44 }
 0x1aa   : > { %v1874_v43 = vadd.f32 %v1854_v25, %v1511_v37 }
 0x1ab   : > { %v1892_v48 = vadd.f32 %v2297_v28, %v1880_v12 }
 0x1ac   : > { %v1886_v31 = vadd.f32 %v2297_v28, %v1874_v43  ;;  %v1871_v15 = vpop.f32.mrf.mxu2 }
 0x1ad   : > { %v1900_v50 = vmax.f32 %v1892_v48, 0.0 }
 0x1ae   : > { %v1894_v59 = vmax.f32 %v1886_v31, 0.0  ;;  %v1527_v41 = vpop.f32.mrf.mxu1 }
 0x1af   : > { %v1908_v36 = vpack.c.bf16 %v1900_v50, %v1900_v50  ;;  %v1528_v60 = vadd.f32 %v1527_v41, %v1454_v58  ;;  %v1439_v24 = vpop.f32.mrf.mxu0 }
 0x1b0   : > { %v1902_v55 = vpack.c.bf16 %v1894_v59, %v1894_v59  ;;  %v1513_v62 = vadd.f32 %v3309_v38, %v1439_v24 }
 0x1b1   : > { %1917 = vst.msk [vmem:[%s3318_s14 + $0x18] sm:$0xf] %vm1910_vm4, %v1908_v36  ;;  %v1881_v9 = vadd.f32 %v1871_v15, %v1528_v60 }
 0x1b2   : > { %1911 = vst.msk [vmem:[%s3318_s14] sm:$0xf] %vm1910_vm4, %v1902_v55  ;;  %v1875_v17 = vadd.f32 %v3306_v61, %v1513_v62 }
 0x1b3   : > { %v1893_v21 = vadd.f32 %v2297_v28, %v1881_v9 }
 0x1b4   : > { %v1887_v52 = vadd.f32 %v2297_v28, %v1875_v17 }
 0x1b5   : > { %v1901_v18 = vmax.f32 %v1893_v21, 0.0 }
 0x1b6   : > { %v1895_v10 = vmax.f32 %v1887_v52, 0.0 }
 0x1b7   : > { %v1909_v56 = vpack.c.bf16 %v1901_v18, %v1901_v18 }
 0x1b8   : > { %v1903_v25 = vpack.c.bf16 %v1895_v10, %v1895_v10 }
 0x1b9   : > { %1918 = vst.msk [vmem:[%s3318_s14 + $0x1c] sm:$0xf] %vm1910_vm4, %v1909_v56 }
 0x1ba   : > { %1912 = vst.msk [vmem:[%s3318_s14 + $0x4] sm:$0xf] %vm1910_vm4, %v1903_v25 }
 0x1bb PF: > { %s14_s19 = sadd.s32 1, %s2336_s19   ;;  %s3400_s15 = smov %s2328_s17 }
 0x1bc   : > { %p11_p13 = scmp.ge.s32.totalorder %s14_s19, 10   ;;  %s3401_s16 = smov %s2332_s18 }
 0x1bd   : > { %s3402_s17 = smov %s3405_s20  ;;  %s3403_s18 = smov %s3409_s21 }
 0x1be   :  { %13 = sbr.rel (!%p11_p13) target bundleno = 3 (0x3), region = 77 }

</bundles_post_ra>
